<compile_context>
chip_gen: v6e
topology: v6e:2x2x1
jax: 0.10.0
libtpu: 0.0.40
codegen_flags: <defaults>
</compile_context>

<pallas_src>
import functools
import math

import jax
import jax.numpy as jnp
from jax.experimental import pallas as pl
from jax.experimental.pallas import tpu as pltpu


# ----------------------------------------------------------------------------
# Self-attention + output projection + residual + LayerNorm
# (one batch element per grid cell)
# ----------------------------------------------------------------------------
def attention_kernel(nh, x_ref, mask_ref,
                     wq_ref, bq_ref, wk_ref, bk_ref, wv_ref, bv_ref,
                     wo_ref, bo_ref, gamma_ref, beta_ref, o_ref):
    _, S, H = x_ref.shape
    hd = wq_ref.shape[2]
    scale = jnp.float32(1.0 / math.sqrt(hd))

    x = x_ref[0]                 # [S, H] in caller dtype (narrow into the MXU)
    m = mask_ref[0]              # [1, S] additive mask, broadcast over queries

    acc = jnp.zeros((S, H), jnp.float32)
    for h in range(nh):          # static unroll over heads
        q_h = jnp.dot(x, wq_ref[h], preferred_element_type=jnp.float32) + bq_ref[h]
        k_h = jnp.dot(x, wk_ref[h], preferred_element_type=jnp.float32) + bk_ref[h]
        v_h = jnp.dot(x, wv_ref[h], preferred_element_type=jnp.float32) + bv_ref[h]
        # scores = q_h @ k_h^T  (contract head dim), scaled + masked
        s = jax.lax.dot_general(q_h, k_h, (((1,), (1,)), ((), ())),
                                preferred_element_type=jnp.float32) * scale
        s = s + m
        s = s - jnp.max(s, axis=-1, keepdims=True)
        p = jnp.exp(s)
        p = p / jnp.sum(p, axis=-1, keepdims=True)
        # TODO(synk): attention-probs dropout is eval-mode identity here.
        ctx_h = jnp.dot(p, v_h, preferred_element_type=jnp.float32)      # [S, hd]
        # fold the output projection per head: sum_h ctx_h @ Wo[h]
        acc = acc + jnp.dot(ctx_h.astype(wo_ref.dtype), wo_ref[h],
                            preferred_element_type=jnp.float32)          # [S, H]

    # output bias + residual + TF-style LayerNorm (eps inside sqrt)
    y = acc + bo_ref[...] + x.astype(jnp.float32)
    u = jnp.mean(y, axis=-1, keepdims=True)
    d = y - u
    var = jnp.mean(d * d, axis=-1, keepdims=True)
    yn = d * jax.lax.rsqrt(var + 1e-12)
    o_ref[0] = (gamma_ref[...] * yn + beta_ref[...]).astype(o_ref.dtype)


def attention_forward(x, mask, wq, bq, wk, bk, wv, bv, wo, bo, gamma, beta,
                      num_heads):
    """x: [B, S, H]; mask: [B, 1, 1, S] additive. Returns [B, S, H]."""
    B, S, H = x.shape
    nh = num_heads
    hd = H // nh

    # Head-major repack so the kernel indexes heads on the leading axis.
    to_heads_in = lambda w: w.reshape(H, nh, hd).transpose(1, 0, 2)   # [nh, H, hd]
    wq3, wk3, wv3 = to_heads_in(wq), to_heads_in(wk), to_heads_in(wv)
    bq3 = bq.reshape(nh, 1, hd)
    bk3 = bk.reshape(nh, 1, hd)
    bv3 = bv.reshape(nh, 1, hd)
    wo3 = wo.reshape(nh, hd, H)                                       # [nh, hd, H]
    bo2 = bo.reshape(1, H)
    g2, be2 = gamma.reshape(1, H), beta.reshape(1, H)
    m3 = mask.reshape(B, 1, S).astype(jnp.float32)

    whole = lambda shp: pl.BlockSpec(shp, lambda b: (0,) * len(shp))

    kernel = functools.partial(attention_kernel, nh)
    out = pl.pallas_call(
        kernel,
        out_shape=jax.ShapeDtypeStruct((B, S, H), x.dtype),
        grid=(B,),
        in_specs=[
            pl.BlockSpec((1, S, H), lambda b: (b, 0, 0)),   # x  (per batch)
            pl.BlockSpec((1, 1, S), lambda b: (b, 0, 0)),   # mask (per batch)
            whole((nh, H, hd)), whole((nh, 1, hd)),          # Wq, bq
            whole((nh, H, hd)), whole((nh, 1, hd)),          # Wk, bk
            whole((nh, H, hd)), whole((nh, 1, hd)),          # Wv, bv
            whole((nh, hd, H)), whole((1, H)),               # Wo, bo
            whole((1, H)), whole((1, H)),                    # gamma, beta
        ],
        out_specs=pl.BlockSpec((1, S, H), lambda b: (b, 0, 0)),
        compiler_params=pltpu.CompilerParams(
            dimension_semantics=("parallel",),
            vmem_limit_bytes=48 * 1024 * 1024),
    )(x, m3, wq3, bq3, wk3, bk3, wv3, bv3, wo3, bo2, g2, be2)
    return out


# ----------------------------------------------------------------------------
# Intermediate (FFN) + residual + LayerNorm, tiled over rows and the FF dim
# ----------------------------------------------------------------------------
def ffn_kernel(x_ref, w1_ref, b1_ref, w2_ref, b2_ref, gamma_ref, beta_ref,
               o_ref, acc_ref):
    k = pl.program_id(1)
    nk = pl.num_programs(1)

    @pl.when(k == 0)
    def _init():
        acc_ref[...] = jnp.zeros_like(acc_ref)

    x = x_ref[...]                                               # [TM, H]
    h = jnp.dot(x, w1_ref[...], preferred_element_type=jnp.float32)
    h = h + b1_ref[...]                                          # [TM, TFF] f32
    # exact erf-based GELU (matches the PyTorch reference gelu)
    h = h * 0.5 * (1.0 + jax.lax.erf(h * jnp.float32(1.0 / math.sqrt(2.0))))
    acc_ref[...] += jnp.dot(h.astype(w2_ref.dtype), w2_ref[...],
                            preferred_element_type=jnp.float32)

    @pl.when(k == nk - 1)
    def _epilogue():
        # dropout is eval-mode identity
        # TODO(synk): training-mode dropout would use pltpu.prng_* here.
        y = acc_ref[...] + b2_ref[...] + x.astype(jnp.float32)
        u = jnp.mean(y, axis=-1, keepdims=True)
        d = y - u
        var = jnp.mean(d * d, axis=-1, keepdims=True)
        yn = d * jax.lax.rsqrt(var + 1e-12)
        o_ref[...] = (gamma_ref[...] * yn + beta_ref[...]).astype(o_ref.dtype)


def _round_up(v, m):
    return ((v + m - 1) // m) * m


def _pick_ff_tile(ff, max_tile=2048):
    if ff <= max_tile:
        return ff
    t = (max_tile // 128) * 128
    while t >= 128:
        if ff % t == 0:
            return t
        t -= 128
    return ff


def intermediate_forward(x, w1, b1, w2, b2, gamma, beta):
    """x: [B, S, H]. Returns LayerNorm(gelu(xW1+b1)W2 + b2 + x)."""
    B, S, H = x.shape
    FF = w1.shape[1]
    M = B * S
    x2 = x.reshape(M, H)

    # Row tile (multiple of 8 sublanes, capped at 256) + padding if needed.
    TM = 256 if M >= 256 else _round_up(M, 8)
    M_pad = _round_up(M, TM)
    if M_pad != M:
        x2 = jnp.pad(x2, ((0, M_pad - M), (0, 0)))
    TFF = _pick_ff_tile(FF)

    b1_2 = b1.reshape(1, FF)
    b2_2 = b2.reshape(1, H)
    g_2 = gamma.reshape(1, H)
    be_2 = beta.reshape(1, H)

    grid = (M_pad // TM, FF // TFF)

    out = pl.pallas_call(
        ffn_kernel,
        out_shape=jax.ShapeDtypeStruct((M_pad, H), x.dtype),
        grid=grid,
        in_specs=[
            pl.BlockSpec((TM, H), lambda i, k: (i, 0)),     # x rows
            pl.BlockSpec((H, TFF), lambda i, k: (0, k)),    # W1 chunk
            pl.BlockSpec((1, TFF), lambda i, k: (0, k)),    # b1 chunk
            pl.BlockSpec((TFF, H), lambda i, k: (k, 0)),    # W2 chunk
            pl.BlockSpec((1, H), lambda i, k: (0, 0)),      # b2   (resident)
            pl.BlockSpec((1, H), lambda i, k: (0, 0)),      # gamma(resident)
            pl.BlockSpec((1, H), lambda i, k: (0, 0)),      # beta (resident)
        ],
        out_specs=pl.BlockSpec((TM, H), lambda i, k: (i, 0)),
        scratch_shapes=[pltpu.VMEM((TM, H), jnp.float32)],  # f32 accumulator
        compiler_params=pltpu.CompilerParams(
            dimension_semantics=("parallel", "arbitrary"),
            vmem_limit_bytes=48 * 1024 * 1024),
    )(x2, w1, b1_2, w2, b2_2, g_2, be_2)

    if M_pad != M:
        out = out[:M]
    return out.reshape(B, S, H)


# ----------------------------------------------------------------------------
# Full Layer = SelfAttention + Intermediate
# ----------------------------------------------------------------------------
def layer_forward(hidden_states, attention_mask, p, num_heads):
    a = attention_forward(hidden_states, attention_mask,
                          p["wq"], p["bq"], p["wk"], p["bk"],
                          p["wv"], p["bv"], p["wo"], p["bo"],
                          p["ln1_g"], p["ln1_b"], num_heads)
    return intermediate_forward(a, p["w1"], p["b1"], p["w2"], p["b2"],
                                p["ln2_g"], p["ln2_b"])


# ----------------------------------------------------------------------------
# Pure-JAX reference (mirrors the PyTorch module in eval mode)
# ----------------------------------------------------------------------------
def reference_layer(x, mask4, p, nh):
    B, S, H = x.shape
    hd = H // nh

    def ln(y, g, b):
        u = jnp.mean(y, -1, keepdims=True)
        s = jnp.mean((y - u) ** 2, -1, keepdims=True)
        return g * ((y - u) / jnp.sqrt(s + 1e-12)) + b

    q = jnp.einsum("bsh,hk->bsk", x, p["wq"]) + p["bq"]
    k = jnp.einsum("bsh,hk->bsk", x, p["wk"]) + p["bk"]
    v = jnp.einsum("bsh,hk->bsk", x, p["wv"]) + p["bv"]
    qh = q.reshape(B, S, nh, hd).transpose(0, 2, 1, 3)
    kh = k.reshape(B, S, nh, hd).transpose(0, 2, 1, 3)
    vh = v.reshape(B, S, nh, hd).transpose(0, 2, 1, 3)
    scores = jnp.einsum("bnqd,bnkd->bnqk", qh, kh) / math.sqrt(hd) + mask4
    probs = jax.nn.softmax(scores, axis=-1)
    ctx = jnp.einsum("bnqk,bnkd->bnqd", probs, vh)
    ctx = ctx.transpose(0, 2, 1, 3).reshape(B, S, H)
    attn = jnp.einsum("bsh,hk->bsk", ctx, p["wo"]) + p["bo"]
    a_out = ln(attn + x, p["ln1_g"], p["ln1_b"])

    h = jnp.einsum("bsh,hf->bsf", a_out, p["w1"]) + p["b1"]
    h = h * 0.5 * (1.0 + jax.lax.erf(h / math.sqrt(2.0)))
    h = jnp.einsum("bsf,fh->bsh", h, p["w2"]) + p["b2"]
    return ln(h + a_out, p["ln2_g"], p["ln2_b"])


if __name__ == "__main__":
    B, S, H, NH = 2, 8, 32, 4
    FF = 4 * H

    key = jax.random.PRNGKey(0)
    ks = jax.random.split(key, 16)

    x = jax.random.normal(ks[0], (B, S, H), dtype=jnp.float32)

    def linear_init(kw, kb, fan_in, fan_out):
        lim = 1.0 / math.sqrt(fan_in)
        w = jax.random.uniform(kw, (fan_in, fan_out), minval=-lim, maxval=lim,
                               dtype=jnp.float32)
        b = jax.random.uniform(kb, (fan_out,), minval=-lim, maxval=lim,
                               dtype=jnp.float32)
        return w, b

    wq, bq = linear_init(ks[1], ks[2], H, H)
    wk, bk = linear_init(ks[3], ks[4], H, H)
    wv, bv = linear_init(ks[5], ks[6], H, H)
    wo, bo = linear_init(ks[7], ks[8], H, H)
    w1, b1 = linear_init(ks[9], ks[10], H, FF)
    w2, b2 = linear_init(ks[11], ks[12], FF, H)

    params = dict(
        wq=wq, bq=bq, wk=wk, bk=bk, wv=wv, bv=bv, wo=wo, bo=bo,
        ln1_g=1.0 + 0.1 * jax.random.normal(ks[13], (H,), jnp.float32),
        ln1_b=0.1 * jax.random.normal(ks[14], (H,), jnp.float32),
        w1=w1, b1=b1, w2=w2, b2=b2,
        ln2_g=jnp.ones((H,), jnp.float32),
        ln2_b=jnp.zeros((H,), jnp.float32),
    )

    # BERT-style additive attention mask: 0 for valid keys, -10000 for padding
    # (mask the last two key positions of the second batch element).
    attn_mask = jnp.zeros((B, 1, 1, S), dtype=jnp.float32)
    attn_mask = attn_mask.at[1, :, :, S - 2:].set(-10000.0)

    out = layer_forward(x, attn_mask, params, NH)
    out = jax.block_until_ready(out)

    ref = reference_layer(x, attn_mask, params, NH)
    assert out.shape == (B, S, H)
    err = float(jnp.max(jnp.abs(out - ref)))
    assert err < 5e-4, f"mismatch vs reference: {err}"

    print("KERNEL_OK")
</pallas_src>

<mosaic_0001>
module attributes {stable_mosaic.version = 11 : i64} {
  func.func @attention_kernel(%arg0: i32, %arg1: memref<1x8x32xf32, #tpu.memory_space<vmem>>, %arg2: memref<1x1x8xf32, #tpu.memory_space<vmem>>, %arg3: memref<4x32x8xf32, #tpu.memory_space<vmem>>, %arg4: memref<4x1x8xf32, #tpu.memory_space<vmem>>, %arg5: memref<4x32x8xf32, #tpu.memory_space<vmem>>, %arg6: memref<4x1x8xf32, #tpu.memory_space<vmem>>, %arg7: memref<4x32x8xf32, #tpu.memory_space<vmem>>, %arg8: memref<4x1x8xf32, #tpu.memory_space<vmem>>, %arg9: memref<4x8x32xf32, #tpu.memory_space<vmem>>, %arg10: memref<1x32xf32, #tpu.memory_space<vmem>>, %arg11: memref<1x32xf32, #tpu.memory_space<vmem>>, %arg12: memref<1x32xf32, #tpu.memory_space<vmem>>, %arg13: memref<1x8x32xf32, #tpu.memory_space<vmem>>) attributes {dimension_semantics = [#tpu.dimension_semantics<parallel>], iteration_bounds = array<i64: 2>, scalar_prefetch = 0 : i64, scratch_operands = 0 : i64, tpu.core_type = #tpu.core_type<tc>, window_params = [{transform_indices = @transform_0, window_bounds = array<i64: 1, 8, 32>}, {transform_indices = @transform_1, window_bounds = array<i64: 1, 1, 8>}, {pipeline_mode = #tpu.pipeline_mode<synchronous>, transform_indices = @transform_2, window_bounds = array<i64: 4, 32, 8>}, {pipeline_mode = #tpu.pipeline_mode<synchronous>, transform_indices = @transform_3, window_bounds = array<i64: 4, 1, 8>}, {pipeline_mode = #tpu.pipeline_mode<synchronous>, transform_indices = @transform_4, window_bounds = array<i64: 4, 32, 8>}, {pipeline_mode = #tpu.pipeline_mode<synchronous>, transform_indices = @transform_5, window_bounds = array<i64: 4, 1, 8>}, {pipeline_mode = #tpu.pipeline_mode<synchronous>, transform_indices = @transform_6, window_bounds = array<i64: 4, 32, 8>}, {pipeline_mode = #tpu.pipeline_mode<synchronous>, transform_indices = @transform_7, window_bounds = array<i64: 4, 1, 8>}, {pipeline_mode = #tpu.pipeline_mode<synchronous>, transform_indices = @transform_8, window_bounds = array<i64: 4, 8, 32>}, {pipeline_mode = #tpu.pipeline_mode<synchronous>, transform_indices = @transform_9, window_bounds = array<i64: 1, 32>}, {pipeline_mode = #tpu.pipeline_mode<synchronous>, transform_indices = @transform_10, window_bounds = array<i64: 1, 32>}, {pipeline_mode = #tpu.pipeline_mode<synchronous>, transform_indices = @transform_11, window_bounds = array<i64: 1, 32>}, {transform_indices = @transform_12, window_bounds = array<i64: 1, 8, 32>}]} {
    %c0 = arith.constant 0 : index
    %c0_0 = arith.constant 0 : index
    %c0_1 = arith.constant 0 : index
    %0 = vector.load %arg1[%c0, %c0_0, %c0_1] : memref<1x8x32xf32, #tpu.memory_space<vmem>>, vector<1x8x32xf32>
    %1 = vector.shape_cast %0 : vector<1x8x32xf32> to vector<8x32xf32>
    %c0_2 = arith.constant 0 : index
    %c0_3 = arith.constant 0 : index
    %c0_4 = arith.constant 0 : index
    %2 = vector.load %arg2[%c0_2, %c0_3, %c0_4] : memref<1x1x8xf32, #tpu.memory_space<vmem>>, vector<1x1x8xf32>
    %3 = vector.shape_cast %2 : vector<1x1x8xf32> to vector<1x8xf32>
    %cst = arith.constant 0.000000e+00 : f32
    %4 = vector.broadcast %cst : f32 to vector<8x32xf32>
    %c0_5 = arith.constant 0 : index
    %c0_6 = arith.constant 0 : index
    %c0_7 = arith.constant 0 : index
    %5 = vector.load %arg3[%c0_5, %c0_6, %c0_7] : memref<4x32x8xf32, #tpu.memory_space<vmem>>, vector<1x32x8xf32>
    %6 = vector.shape_cast %5 : vector<1x32x8xf32> to vector<32x8xf32>
    %cst_8 = arith.constant dense<0.000000e+00> : vector<8x8xf32>
    %7 = tpu.matmul %1, %6, %cst_8 {dimension_numbers = #tpu.dot_dimension_numbers<[1], [0], [0], [1], [0, 0, 1, 1], [], []>} : vector<8x32xf32>, vector<32x8xf32>, vector<8x8xf32> -> vector<8x8xf32>
    %c0_9 = arith.constant 0 : index
    %c0_10 = arith.constant 0 : index
    %c0_11 = arith.constant 0 : index
    %8 = vector.load %arg4[%c0_9, %c0_10, %c0_11] : memref<4x1x8xf32, #tpu.memory_space<vmem>>, vector<1x1x8xf32>
    %9 = vector.shape_cast %8 : vector<1x1x8xf32> to vector<1x8xf32>
    %10 = vector.broadcast %9 : vector<1x8xf32> to vector<8x8xf32>
    %11 = arith.addf %7, %10 : vector<8x8xf32>
    %c0_12 = arith.constant 0 : index
    %c0_13 = arith.constant 0 : index
    %c0_14 = arith.constant 0 : index
    %12 = vector.load %arg5[%c0_12, %c0_13, %c0_14] : memref<4x32x8xf32, #tpu.memory_space<vmem>>, vector<1x32x8xf32>
    %13 = vector.shape_cast %12 : vector<1x32x8xf32> to vector<32x8xf32>
    %cst_15 = arith.constant dense<0.000000e+00> : vector<8x8xf32>
    %14 = tpu.matmul %1, %13, %cst_15 {dimension_numbers = #tpu.dot_dimension_numbers<[1], [0], [0], [1], [0, 0, 1, 1], [], []>} : vector<8x32xf32>, vector<32x8xf32>, vector<8x8xf32> -> vector<8x8xf32>
    %c0_16 = arith.constant 0 : index
    %c0_17 = arith.constant 0 : index
    %c0_18 = arith.constant 0 : index
    %15 = vector.load %arg6[%c0_16, %c0_17, %c0_18] : memref<4x1x8xf32, #tpu.memory_space<vmem>>, vector<1x1x8xf32>
    %16 = vector.shape_cast %15 : vector<1x1x8xf32> to vector<1x8xf32>
    %17 = vector.broadcast %16 : vector<1x8xf32> to vector<8x8xf32>
    %18 = arith.addf %14, %17 : vector<8x8xf32>
    %c0_19 = arith.constant 0 : index
    %c0_20 = arith.constant 0 : index
    %c0_21 = arith.constant 0 : index
    %19 = vector.load %arg7[%c0_19, %c0_20, %c0_21] : memref<4x32x8xf32, #tpu.memory_space<vmem>>, vector<1x32x8xf32>
    %20 = vector.shape_cast %19 : vector<1x32x8xf32> to vector<32x8xf32>
    %cst_22 = arith.constant dense<0.000000e+00> : vector<8x8xf32>
    %21 = tpu.matmul %1, %20, %cst_22 {dimension_numbers = #tpu.dot_dimension_numbers<[1], [0], [0], [1], [0, 0, 1, 1], [], []>} : vector<8x32xf32>, vector<32x8xf32>, vector<8x8xf32> -> vector<8x8xf32>
    %c0_23 = arith.constant 0 : index
    %c0_24 = arith.constant 0 : index
    %c0_25 = arith.constant 0 : index
    %22 = vector.load %arg8[%c0_23, %c0_24, %c0_25] : memref<4x1x8xf32, #tpu.memory_space<vmem>>, vector<1x1x8xf32>
    %23 = vector.shape_cast %22 : vector<1x1x8xf32> to vector<1x8xf32>
    %24 = vector.broadcast %23 : vector<1x8xf32> to vector<8x8xf32>
    %25 = arith.addf %21, %24 : vector<8x8xf32>
    %cst_26 = arith.constant dense<0.000000e+00> : vector<8x8xf32>
    %26 = tpu.matmul %11, %18, %cst_26 {dimension_numbers = #tpu.dot_dimension_numbers<[1], [1], [0], [0], [0, 0, 1, 0], [], []>} : vector<8x8xf32>, vector<8x8xf32>, vector<8x8xf32> -> vector<8x8xf32>
    %cst_27 = arith.constant 0.353553385 : f32
    %27 = vector.broadcast %cst_27 : f32 to vector<8x8xf32>
    %28 = arith.mulf %26, %27 : vector<8x8xf32>
    %29 = vector.broadcast %3 : vector<1x8xf32> to vector<8x8xf32>
    %30 = arith.addf %28, %29 : vector<8x8xf32>
    %cst_28 = arith.constant dense<0xFF800000> : vector<8xf32>
    %31 = vector.multi_reduction <maximumf>, %30, %cst_28 [1] : vector<8x8xf32> to vector<8xf32>
    %32 = vector.shape_cast %31 : vector<8xf32> to vector<8x1xf32>
    %33 = vector.broadcast %32 : vector<8x1xf32> to vector<8x8xf32>
    %34 = arith.subf %30, %33 : vector<8x8xf32>
    %35 = math.exp %34 : vector<8x8xf32>
    %cst_29 = arith.constant dense<0.000000e+00> : vector<8xf32>
    %36 = vector.multi_reduction <add>, %35, %cst_29 [1] : vector<8x8xf32> to vector<8xf32>
    %37 = vector.shape_cast %36 : vector<8xf32> to vector<8x1xf32>
    %38 = vector.broadcast %37 : vector<8x1xf32> to vector<8x8xf32>
    %39 = arith.divf %35, %38 : vector<8x8xf32>
    %cst_30 = arith.constant dense<0.000000e+00> : vector<8x8xf32>
    %40 = tpu.matmul %39, %25, %cst_30 {dimension_numbers = #tpu.dot_dimension_numbers<[1], [0], [0], [1], [0, 0, 1, 1], [], []>} : vector<8x8xf32>, vector<8x8xf32>, vector<8x8xf32> -> vector<8x8xf32>
    %c0_31 = arith.constant 0 : index
    %c0_32 = arith.constant 0 : index
    %c0_33 = arith.constant 0 : index
    %41 = vector.load %arg9[%c0_31, %c0_32, %c0_33] : memref<4x8x32xf32, #tpu.memory_space<vmem>>, vector<1x8x32xf32>
    %42 = vector.shape_cast %41 : vector<1x8x32xf32> to vector<8x32xf32>
    %cst_34 = arith.constant dense<0.000000e+00> : vector<8x32xf32>
    %43 = tpu.matmul %40, %42, %cst_34 {dimension_numbers = #tpu.dot_dimension_numbers<[1], [0], [0], [1], [0, 0, 1, 1], [], []>} : vector<8x8xf32>, vector<8x32xf32>, vector<8x32xf32> -> vector<8x32xf32>
    %44 = arith.addf %4, %43 : vector<8x32xf32>
    %c1 = arith.constant 1 : index
    %c0_35 = arith.constant 0 : index
    %c0_36 = arith.constant 0 : index
    %45 = vector.load %arg3[%c1, %c0_35, %c0_36] : memref<4x32x8xf32, #tpu.memory_space<vmem>>, vector<1x32x8xf32>
    %46 = vector.shape_cast %45 : vector<1x32x8xf32> to vector<32x8xf32>
    %cst_37 = arith.constant dense<0.000000e+00> : vector<8x8xf32>
    %47 = tpu.matmul %1, %46, %cst_37 {dimension_numbers = #tpu.dot_dimension_numbers<[1], [0], [0], [1], [0, 0, 1, 1], [], []>} : vector<8x32xf32>, vector<32x8xf32>, vector<8x8xf32> -> vector<8x8xf32>
    %c1_38 = arith.constant 1 : index
    %c0_39 = arith.constant 0 : index
    %c0_40 = arith.constant 0 : index
    %48 = vector.load %arg4[%c1_38, %c0_39, %c0_40] : memref<4x1x8xf32, #tpu.memory_space<vmem>>, vector<1x1x8xf32>
    %49 = vector.shape_cast %48 : vector<1x1x8xf32> to vector<1x8xf32>
    %50 = vector.broadcast %49 : vector<1x8xf32> to vector<8x8xf32>
    %51 = arith.addf %47, %50 : vector<8x8xf32>
    %c1_41 = arith.constant 1 : index
    %c0_42 = arith.constant 0 : index
    %c0_43 = arith.constant 0 : index
    %52 = vector.load %arg5[%c1_41, %c0_42, %c0_43] : memref<4x32x8xf32, #tpu.memory_space<vmem>>, vector<1x32x8xf32>
    %53 = vector.shape_cast %52 : vector<1x32x8xf32> to vector<32x8xf32>
    %cst_44 = arith.constant dense<0.000000e+00> : vector<8x8xf32>
    %54 = tpu.matmul %1, %53, %cst_44 {dimension_numbers = #tpu.dot_dimension_numbers<[1], [0], [0], [1], [0, 0, 1, 1], [], []>} : vector<8x32xf32>, vector<32x8xf32>, vector<8x8xf32> -> vector<8x8xf32>
    %c1_45 = arith.constant 1 : index
    %c0_46 = arith.constant 0 : index
    %c0_47 = arith.constant 0 : index
    %55 = vector.load %arg6[%c1_45, %c0_46, %c0_47] : memref<4x1x8xf32, #tpu.memory_space<vmem>>, vector<1x1x8xf32>
    %56 = vector.shape_cast %55 : vector<1x1x8xf32> to vector<1x8xf32>
    %57 = vector.broadcast %56 : vector<1x8xf32> to vector<8x8xf32>
    %58 = arith.addf %54, %57 : vector<8x8xf32>
    %c1_48 = arith.constant 1 : index
    %c0_49 = arith.constant 0 : index
    %c0_50 = arith.constant 0 : index
    %59 = vector.load %arg7[%c1_48, %c0_49, %c0_50] : memref<4x32x8xf32, #tpu.memory_space<vmem>>, vector<1x32x8xf32>
    %60 = vector.shape_cast %59 : vector<1x32x8xf32> to vector<32x8xf32>
    %cst_51 = arith.constant dense<0.000000e+00> : vector<8x8xf32>
    %61 = tpu.matmul %1, %60, %cst_51 {dimension_numbers = #tpu.dot_dimension_numbers<[1], [0], [0], [1], [0, 0, 1, 1], [], []>} : vector<8x32xf32>, vector<32x8xf32>, vector<8x8xf32> -> vector<8x8xf32>
    %c1_52 = arith.constant 1 : index
    %c0_53 = arith.constant 0 : index
    %c0_54 = arith.constant 0 : index
    %62 = vector.load %arg8[%c1_52, %c0_53, %c0_54] : memref<4x1x8xf32, #tpu.memory_space<vmem>>, vector<1x1x8xf32>
    %63 = vector.shape_cast %62 : vector<1x1x8xf32> to vector<1x8xf32>
    %64 = vector.broadcast %63 : vector<1x8xf32> to vector<8x8xf32>
    %65 = arith.addf %61, %64 : vector<8x8xf32>
    %cst_55 = arith.constant dense<0.000000e+00> : vector<8x8xf32>
    %66 = tpu.matmul %51, %58, %cst_55 {dimension_numbers = #tpu.dot_dimension_numbers<[1], [1], [0], [0], [0, 0, 1, 0], [], []>} : vector<8x8xf32>, vector<8x8xf32>, vector<8x8xf32> -> vector<8x8xf32>
    %cst_56 = arith.constant 0.353553385 : f32
    %67 = vector.broadcast %cst_56 : f32 to vector<8x8xf32>
    %68 = arith.mulf %66, %67 : vector<8x8xf32>
    %69 = vector.broadcast %3 : vector<1x8xf32> to vector<8x8xf32>
    %70 = arith.addf %68, %69 : vector<8x8xf32>
    %cst_57 = arith.constant dense<0xFF800000> : vector<8xf32>
    %71 = vector.multi_reduction <maximumf>, %70, %cst_57 [1] : vector<8x8xf32> to vector<8xf32>
    %72 = vector.shape_cast %71 : vector<8xf32> to vector<8x1xf32>
    %73 = vector.broadcast %72 : vector<8x1xf32> to vector<8x8xf32>
    %74 = arith.subf %70, %73 : vector<8x8xf32>
    %75 = math.exp %74 : vector<8x8xf32>
    %cst_58 = arith.constant dense<0.000000e+00> : vector<8xf32>
    %76 = vector.multi_reduction <add>, %75, %cst_58 [1] : vector<8x8xf32> to vector<8xf32>
    %77 = vector.shape_cast %76 : vector<8xf32> to vector<8x1xf32>
    %78 = vector.broadcast %77 : vector<8x1xf32> to vector<8x8xf32>
    %79 = arith.divf %75, %78 : vector<8x8xf32>
    %cst_59 = arith.constant dense<0.000000e+00> : vector<8x8xf32>
    %80 = tpu.matmul %79, %65, %cst_59 {dimension_numbers = #tpu.dot_dimension_numbers<[1], [0], [0], [1], [0, 0, 1, 1], [], []>} : vector<8x8xf32>, vector<8x8xf32>, vector<8x8xf32> -> vector<8x8xf32>
    %c1_60 = arith.constant 1 : index
    %c0_61 = arith.constant 0 : index
    %c0_62 = arith.constant 0 : index
    %81 = vector.load %arg9[%c1_60, %c0_61, %c0_62] : memref<4x8x32xf32, #tpu.memory_space<vmem>>, vector<1x8x32xf32>
    %82 = vector.shape_cast %81 : vector<1x8x32xf32> to vector<8x32xf32>
    %cst_63 = arith.constant dense<0.000000e+00> : vector<8x32xf32>
    %83 = tpu.matmul %80, %82, %cst_63 {dimension_numbers = #tpu.dot_dimension_numbers<[1], [0], [0], [1], [0, 0, 1, 1], [], []>} : vector<8x8xf32>, vector<8x32xf32>, vector<8x32xf32> -> vector<8x32xf32>
    %84 = arith.addf %44, %83 : vector<8x32xf32>
    %c2 = arith.constant 2 : index
    %c0_64 = arith.constant 0 : index
    %c0_65 = arith.constant 0 : index
    %85 = vector.load %arg3[%c2, %c0_64, %c0_65] : memref<4x32x8xf32, #tpu.memory_space<vmem>>, vector<1x32x8xf32>
    %86 = vector.shape_cast %85 : vector<1x32x8xf32> to vector<32x8xf32>
    %cst_66 = arith.constant dense<0.000000e+00> : vector<8x8xf32>
    %87 = tpu.matmul %1, %86, %cst_66 {dimension_numbers = #tpu.dot_dimension_numbers<[1], [0], [0], [1], [0, 0, 1, 1], [], []>} : vector<8x32xf32>, vector<32x8xf32>, vector<8x8xf32> -> vector<8x8xf32>
    %c2_67 = arith.constant 2 : index
    %c0_68 = arith.constant 0 : index
    %c0_69 = arith.constant 0 : index
    %88 = vector.load %arg4[%c2_67, %c0_68, %c0_69] : memref<4x1x8xf32, #tpu.memory_space<vmem>>, vector<1x1x8xf32>
    %89 = vector.shape_cast %88 : vector<1x1x8xf32> to vector<1x8xf32>
    %90 = vector.broadcast %89 : vector<1x8xf32> to vector<8x8xf32>
    %91 = arith.addf %87, %90 : vector<8x8xf32>
    %c2_70 = arith.constant 2 : index
    %c0_71 = arith.constant 0 : index
    %c0_72 = arith.constant 0 : index
    %92 = vector.load %arg5[%c2_70, %c0_71, %c0_72] : memref<4x32x8xf32, #tpu.memory_space<vmem>>, vector<1x32x8xf32>
    %93 = vector.shape_cast %92 : vector<1x32x8xf32> to vector<32x8xf32>
    %cst_73 = arith.constant dense<0.000000e+00> : vector<8x8xf32>
    %94 = tpu.matmul %1, %93, %cst_73 {dimension_numbers = #tpu.dot_dimension_numbers<[1], [0], [0], [1], [0, 0, 1, 1], [], []>} : vector<8x32xf32>, vector<32x8xf32>, vector<8x8xf32> -> vector<8x8xf32>
    %c2_74 = arith.constant 2 : index
    %c0_75 = arith.constant 0 : index
    %c0_76 = arith.constant 0 : index
    %95 = vector.load %arg6[%c2_74, %c0_75, %c0_76] : memref<4x1x8xf32, #tpu.memory_space<vmem>>, vector<1x1x8xf32>
    %96 = vector.shape_cast %95 : vector<1x1x8xf32> to vector<1x8xf32>
    %97 = vector.broadcast %96 : vector<1x8xf32> to vector<8x8xf32>
    %98 = arith.addf %94, %97 : vector<8x8xf32>
    %c2_77 = arith.constant 2 : index
    %c0_78 = arith.constant 0 : index
    %c0_79 = arith.constant 0 : index
    %99 = vector.load %arg7[%c2_77, %c0_78, %c0_79] : memref<4x32x8xf32, #tpu.memory_space<vmem>>, vector<1x32x8xf32>
    %100 = vector.shape_cast %99 : vector<1x32x8xf32> to vector<32x8xf32>
    %cst_80 = arith.constant dense<0.000000e+00> : vector<8x8xf32>
    %101 = tpu.matmul %1, %100, %cst_80 {dimension_numbers = #tpu.dot_dimension_numbers<[1], [0], [0], [1], [0, 0, 1, 1], [], []>} : vector<8x32xf32>, vector<32x8xf32>, vector<8x8xf32> -> vector<8x8xf32>
    %c2_81 = arith.constant 2 : index
    %c0_82 = arith.constant 0 : index
    %c0_83 = arith.constant 0 : index
    %102 = vector.load %arg8[%c2_81, %c0_82, %c0_83] : memref<4x1x8xf32, #tpu.memory_space<vmem>>, vector<1x1x8xf32>
    %103 = vector.shape_cast %102 : vector<1x1x8xf32> to vector<1x8xf32>
    %104 = vector.broadcast %103 : vector<1x8xf32> to vector<8x8xf32>
    %105 = arith.addf %101, %104 : vector<8x8xf32>
    %cst_84 = arith.constant dense<0.000000e+00> : vector<8x8xf32>
    %106 = tpu.matmul %91, %98, %cst_84 {dimension_numbers = #tpu.dot_dimension_numbers<[1], [1], [0], [0], [0, 0, 1, 0], [], []>} : vector<8x8xf32>, vector<8x8xf32>, vector<8x8xf32> -> vector<8x8xf32>
    %cst_85 = arith.constant 0.353553385 : f32
    %107 = vector.broadcast %cst_85 : f32 to vector<8x8xf32>
    %108 = arith.mulf %106, %107 : vector<8x8xf32>
    %109 = vector.broadcast %3 : vector<1x8xf32> to vector<8x8xf32>
    %110 = arith.addf %108, %109 : vector<8x8xf32>
    %cst_86 = arith.constant dense<0xFF800000> : vector<8xf32>
    %111 = vector.multi_reduction <maximumf>, %110, %cst_86 [1] : vector<8x8xf32> to vector<8xf32>
    %112 = vector.shape_cast %111 : vector<8xf32> to vector<8x1xf32>
    %113 = vector.broadcast %112 : vector<8x1xf32> to vector<8x8xf32>
    %114 = arith.subf %110, %113 : vector<8x8xf32>
    %115 = math.exp %114 : vector<8x8xf32>
    %cst_87 = arith.constant dense<0.000000e+00> : vector<8xf32>
    %116 = vector.multi_reduction <add>, %115, %cst_87 [1] : vector<8x8xf32> to vector<8xf32>
    %117 = vector.shape_cast %116 : vector<8xf32> to vector<8x1xf32>
    %118 = vector.broadcast %117 : vector<8x1xf32> to vector<8x8xf32>
    %119 = arith.divf %115, %118 : vector<8x8xf32>
    %cst_88 = arith.constant dense<0.000000e+00> : vector<8x8xf32>
    %120 = tpu.matmul %119, %105, %cst_88 {dimension_numbers = #tpu.dot_dimension_numbers<[1], [0], [0], [1], [0, 0, 1, 1], [], []>} : vector<8x8xf32>, vector<8x8xf32>, vector<8x8xf32> -> vector<8x8xf32>
    %c2_89 = arith.constant 2 : index
    %c0_90 = arith.constant 0 : index
    %c0_91 = arith.constant 0 : index
    %121 = vector.load %arg9[%c2_89, %c0_90, %c0_91] : memref<4x8x32xf32, #tpu.memory_space<vmem>>, vector<1x8x32xf32>
    %122 = vector.shape_cast %121 : vector<1x8x32xf32> to vector<8x32xf32>
    %cst_92 = arith.constant dense<0.000000e+00> : vector<8x32xf32>
    %123 = tpu.matmul %120, %122, %cst_92 {dimension_numbers = #tpu.dot_dimension_numbers<[1], [0], [0], [1], [0, 0, 1, 1], [], []>} : vector<8x8xf32>, vector<8x32xf32>, vector<8x32xf32> -> vector<8x32xf32>
    %124 = arith.addf %84, %123 : vector<8x32xf32>
    %c3 = arith.constant 3 : index
    %c0_93 = arith.constant 0 : index
    %c0_94 = arith.constant 0 : index
    %125 = vector.load %arg3[%c3, %c0_93, %c0_94] : memref<4x32x8xf32, #tpu.memory_space<vmem>>, vector<1x32x8xf32>
    %126 = vector.shape_cast %125 : vector<1x32x8xf32> to vector<32x8xf32>
    %cst_95 = arith.constant dense<0.000000e+00> : vector<8x8xf32>
    %127 = tpu.matmul %1, %126, %cst_95 {dimension_numbers = #tpu.dot_dimension_numbers<[1], [0], [0], [1], [0, 0, 1, 1], [], []>} : vector<8x32xf32>, vector<32x8xf32>, vector<8x8xf32> -> vector<8x8xf32>
    %c3_96 = arith.constant 3 : index
    %c0_97 = arith.constant 0 : index
    %c0_98 = arith.constant 0 : index
    %128 = vector.load %arg4[%c3_96, %c0_97, %c0_98] : memref<4x1x8xf32, #tpu.memory_space<vmem>>, vector<1x1x8xf32>
    %129 = vector.shape_cast %128 : vector<1x1x8xf32> to vector<1x8xf32>
    %130 = vector.broadcast %129 : vector<1x8xf32> to vector<8x8xf32>
    %131 = arith.addf %127, %130 : vector<8x8xf32>
    %c3_99 = arith.constant 3 : index
    %c0_100 = arith.constant 0 : index
    %c0_101 = arith.constant 0 : index
    %132 = vector.load %arg5[%c3_99, %c0_100, %c0_101] : memref<4x32x8xf32, #tpu.memory_space<vmem>>, vector<1x32x8xf32>
    %133 = vector.shape_cast %132 : vector<1x32x8xf32> to vector<32x8xf32>
    %cst_102 = arith.constant dense<0.000000e+00> : vector<8x8xf32>
    %134 = tpu.matmul %1, %133, %cst_102 {dimension_numbers = #tpu.dot_dimension_numbers<[1], [0], [0], [1], [0, 0, 1, 1], [], []>} : vector<8x32xf32>, vector<32x8xf32>, vector<8x8xf32> -> vector<8x8xf32>
    %c3_103 = arith.constant 3 : index
    %c0_104 = arith.constant 0 : index
    %c0_105 = arith.constant 0 : index
    %135 = vector.load %arg6[%c3_103, %c0_104, %c0_105] : memref<4x1x8xf32, #tpu.memory_space<vmem>>, vector<1x1x8xf32>
    %136 = vector.shape_cast %135 : vector<1x1x8xf32> to vector<1x8xf32>
    %137 = vector.broadcast %136 : vector<1x8xf32> to vector<8x8xf32>
    %138 = arith.addf %134, %137 : vector<8x8xf32>
    %c3_106 = arith.constant 3 : index
    %c0_107 = arith.constant 0 : index
    %c0_108 = arith.constant 0 : index
    %139 = vector.load %arg7[%c3_106, %c0_107, %c0_108] : memref<4x32x8xf32, #tpu.memory_space<vmem>>, vector<1x32x8xf32>
    %140 = vector.shape_cast %139 : vector<1x32x8xf32> to vector<32x8xf32>
    %cst_109 = arith.constant dense<0.000000e+00> : vector<8x8xf32>
    %141 = tpu.matmul %1, %140, %cst_109 {dimension_numbers = #tpu.dot_dimension_numbers<[1], [0], [0], [1], [0, 0, 1, 1], [], []>} : vector<8x32xf32>, vector<32x8xf32>, vector<8x8xf32> -> vector<8x8xf32>
    %c3_110 = arith.constant 3 : index
    %c0_111 = arith.constant 0 : index
    %c0_112 = arith.constant 0 : index
    %142 = vector.load %arg8[%c3_110, %c0_111, %c0_112] : memref<4x1x8xf32, #tpu.memory_space<vmem>>, vector<1x1x8xf32>
    %143 = vector.shape_cast %142 : vector<1x1x8xf32> to vector<1x8xf32>
    %144 = vector.broadcast %143 : vector<1x8xf32> to vector<8x8xf32>
    %145 = arith.addf %141, %144 : vector<8x8xf32>
    %cst_113 = arith.constant dense<0.000000e+00> : vector<8x8xf32>
    %146 = tpu.matmul %131, %138, %cst_113 {dimension_numbers = #tpu.dot_dimension_numbers<[1], [1], [0], [0], [0, 0, 1, 0], [], []>} : vector<8x8xf32>, vector<8x8xf32>, vector<8x8xf32> -> vector<8x8xf32>
    %cst_114 = arith.constant 0.353553385 : f32
    %147 = vector.broadcast %cst_114 : f32 to vector<8x8xf32>
    %148 = arith.mulf %146, %147 : vector<8x8xf32>
    %149 = vector.broadcast %3 : vector<1x8xf32> to vector<8x8xf32>
    %150 = arith.addf %148, %149 : vector<8x8xf32>
    %cst_115 = arith.constant dense<0xFF800000> : vector<8xf32>
    %151 = vector.multi_reduction <maximumf>, %150, %cst_115 [1] : vector<8x8xf32> to vector<8xf32>
    %152 = vector.shape_cast %151 : vector<8xf32> to vector<8x1xf32>
    %153 = vector.broadcast %152 : vector<8x1xf32> to vector<8x8xf32>
    %154 = arith.subf %150, %153 : vector<8x8xf32>
    %155 = math.exp %154 : vector<8x8xf32>
    %cst_116 = arith.constant dense<0.000000e+00> : vector<8xf32>
    %156 = vector.multi_reduction <add>, %155, %cst_116 [1] : vector<8x8xf32> to vector<8xf32>
    %157 = vector.shape_cast %156 : vector<8xf32> to vector<8x1xf32>
    %158 = vector.broadcast %157 : vector<8x1xf32> to vector<8x8xf32>
    %159 = arith.divf %155, %158 : vector<8x8xf32>
    %cst_117 = arith.constant dense<0.000000e+00> : vector<8x8xf32>
    %160 = tpu.matmul %159, %145, %cst_117 {dimension_numbers = #tpu.dot_dimension_numbers<[1], [0], [0], [1], [0, 0, 1, 1], [], []>} : vector<8x8xf32>, vector<8x8xf32>, vector<8x8xf32> -> vector<8x8xf32>
    %c3_118 = arith.constant 3 : index
    %c0_119 = arith.constant 0 : index
    %c0_120 = arith.constant 0 : index
    %161 = vector.load %arg9[%c3_118, %c0_119, %c0_120] : memref<4x8x32xf32, #tpu.memory_space<vmem>>, vector<1x8x32xf32>
    %162 = vector.shape_cast %161 : vector<1x8x32xf32> to vector<8x32xf32>
    %cst_121 = arith.constant dense<0.000000e+00> : vector<8x32xf32>
    %163 = tpu.matmul %160, %162, %cst_121 {dimension_numbers = #tpu.dot_dimension_numbers<[1], [0], [0], [1], [0, 0, 1, 1], [], []>} : vector<8x8xf32>, vector<8x32xf32>, vector<8x32xf32> -> vector<8x32xf32>
    %164 = arith.addf %124, %163 : vector<8x32xf32>
    %c0_122 = arith.constant 0 : index
    %c0_123 = arith.constant 0 : index
    %165 = vector.load %arg10[%c0_122, %c0_123] : memref<1x32xf32, #tpu.memory_space<vmem>>, vector<1x32xf32>
    %166 = vector.broadcast %165 : vector<1x32xf32> to vector<8x32xf32>
    %167 = arith.addf %164, %166 : vector<8x32xf32>
    %168 = arith.addf %167, %1 : vector<8x32xf32>
    %cst_124 = arith.constant dense<0.000000e+00> : vector<8xf32>
    %169 = vector.multi_reduction <add>, %168, %cst_124 [1] : vector<8x32xf32> to vector<8xf32>
    %170 = vector.shape_cast %169 : vector<8xf32> to vector<8x1xf32>
    %cst_125 = arith.constant 3.200000e+01 : f32
    %171 = vector.broadcast %cst_125 : f32 to vector<8x1xf32>
    %172 = arith.divf %170, %171 : vector<8x1xf32>
    %173 = vector.broadcast %172 : vector<8x1xf32> to vector<8x32xf32>
    %174 = arith.subf %168, %173 : vector<8x32xf32>
    %175 = arith.mulf %174, %174 : vector<8x32xf32>
    %cst_126 = arith.constant dense<0.000000e+00> : vector<8xf32>
    %176 = vector.multi_reduction <add>, %175, %cst_126 [1] : vector<8x32xf32> to vector<8xf32>
    %177 = vector.shape_cast %176 : vector<8xf32> to vector<8x1xf32>
    %cst_127 = arith.constant 3.200000e+01 : f32
    %178 = vector.broadcast %cst_127 : f32 to vector<8x1xf32>
    %179 = arith.divf %177, %178 : vector<8x1xf32>
    %cst_128 = arith.constant 9.99999996E-13 : f32
    %180 = vector.broadcast %cst_128 : f32 to vector<8x1xf32>
    %181 = arith.addf %179, %180 : vector<8x1xf32>
    %182 = math.rsqrt %181 : vector<8x1xf32>
    %183 = vector.broadcast %182 : vector<8x1xf32> to vector<8x32xf32>
    %184 = arith.mulf %174, %183 : vector<8x32xf32>
    %c0_129 = arith.constant 0 : index
    %c0_130 = arith.constant 0 : index
    %185 = vector.load %arg11[%c0_129, %c0_130] : memref<1x32xf32, #tpu.memory_space<vmem>>, vector<1x32xf32>
    %186 = vector.broadcast %185 : vector<1x32xf32> to vector<8x32xf32>
    %187 = arith.mulf %186, %184 : vector<8x32xf32>
    %c0_131 = arith.constant 0 : index
    %c0_132 = arith.constant 0 : index
    %188 = vector.load %arg12[%c0_131, %c0_132] : memref<1x32xf32, #tpu.memory_space<vmem>>, vector<1x32xf32>
    %189 = vector.broadcast %188 : vector<1x32xf32> to vector<8x32xf32>
    %190 = arith.addf %187, %189 : vector<8x32xf32>
    %c0_133 = arith.constant 0 : index
    %c0_134 = arith.constant 0 : index
    %c0_135 = arith.constant 0 : index
    %191 = vector.load %arg13[%c0_133, %c0_134, %c0_135] : memref<1x8x32xf32, #tpu.memory_space<vmem>>, vector<1x8x32xf32>
    %192 = vector.shape_cast %191 : vector<1x8x32xf32> to vector<8x32xf32>
    %193 = vector.shape_cast %190 : vector<8x32xf32> to vector<1x8x32xf32>
    tpu.vector_store %arg13[%c0_133, %c0_134, %c0_135], %193 {strides = array<i32>} : memref<1x8x32xf32, #tpu.memory_space<vmem>>, vector<1x8x32xf32>,
    return
  }
  func.func @transform_0(%arg0: i32) -> (i32, i32, i32) {
    %c0_i32 = arith.constant 0 : i32
    %c0_i32_0 = arith.constant 0 : i32
    %c0_i32_1 = arith.constant 0 : i32
    return %arg0, %c0_i32, %c0_i32_0 : i32, i32, i32
  }
  func.func @transform_1(%arg0: i32) -> (i32, i32, i32) {
    %c0_i32 = arith.constant 0 : i32
    %c0_i32_0 = arith.constant 0 : i32
    %c0_i32_1 = arith.constant 0 : i32
    return %arg0, %c0_i32, %c0_i32_0 : i32, i32, i32
  }
  func.func @transform_2(%arg0: i32) -> (i32, i32, i32) {
    %c0_i32 = arith.constant 0 : i32
    %c0_i32_0 = arith.constant 0 : i32
    %c0_i32_1 = arith.constant 0 : i32
    %c0_i32_2 = arith.constant 0 : i32
    return %c0_i32, %c0_i32_0, %c0_i32_1 : i32, i32, i32
  }
  func.func @transform_3(%arg0: i32) -> (i32, i32, i32) {
    %c0_i32 = arith.constant 0 : i32
    %c0_i32_0 = arith.constant 0 : i32
    %c0_i32_1 = arith.constant 0 : i32
    %c0_i32_2 = arith.constant 0 : i32
    return %c0_i32, %c0_i32_0, %c0_i32_1 : i32, i32, i32
  }
  func.func @transform_4(%arg0: i32) -> (i32, i32, i32) {
    %c0_i32 = arith.constant 0 : i32
    %c0_i32_0 = arith.constant 0 : i32
    %c0_i32_1 = arith.constant 0 : i32
    %c0_i32_2 = arith.constant 0 : i32
    return %c0_i32, %c0_i32_0, %c0_i32_1 : i32, i32, i32
  }
  func.func @transform_5(%arg0: i32) -> (i32, i32, i32) {
    %c0_i32 = arith.constant 0 : i32
    %c0_i32_0 = arith.constant 0 : i32
    %c0_i32_1 = arith.constant 0 : i32
    %c0_i32_2 = arith.constant 0 : i32
    return %c0_i32, %c0_i32_0, %c0_i32_1 : i32, i32, i32
  }
  func.func @transform_6(%arg0: i32) -> (i32, i32, i32) {
    %c0_i32 = arith.constant 0 : i32
    %c0_i32_0 = arith.constant 0 : i32
    %c0_i32_1 = arith.constant 0 : i32
    %c0_i32_2 = arith.constant 0 : i32
    return %c0_i32, %c0_i32_0, %c0_i32_1 : i32, i32, i32
  }
  func.func @transform_7(%arg0: i32) -> (i32, i32, i32) {
    %c0_i32 = arith.constant 0 : i32
    %c0_i32_0 = arith.constant 0 : i32
    %c0_i32_1 = arith.constant 0 : i32
    %c0_i32_2 = arith.constant 0 : i32
    return %c0_i32, %c0_i32_0, %c0_i32_1 : i32, i32, i32
  }
  func.func @transform_8(%arg0: i32) -> (i32, i32, i32) {
    %c0_i32 = arith.constant 0 : i32
    %c0_i32_0 = arith.constant 0 : i32
    %c0_i32_1 = arith.constant 0 : i32
    %c0_i32_2 = arith.constant 0 : i32
    return %c0_i32, %c0_i32_0, %c0_i32_1 : i32, i32, i32
  }
  func.func @transform_9(%arg0: i32) -> (i32, i32) {
    %c0_i32 = arith.constant 0 : i32
    %c0_i32_0 = arith.constant 0 : i32
    %c0_i32_1 = arith.constant 0 : i32
    return %c0_i32, %c0_i32_0 : i32, i32
  }
  func.func @transform_10(%arg0: i32) -> (i32, i32) {
    %c0_i32 = arith.constant 0 : i32
    %c0_i32_0 = arith.constant 0 : i32
    %c0_i32_1 = arith.constant 0 : i32
    return %c0_i32, %c0_i32_0 : i32, i32
  }
  func.func @transform_11(%arg0: i32) -> (i32, i32) {
    %c0_i32 = arith.constant 0 : i32
    %c0_i32_0 = arith.constant 0 : i32
    %c0_i32_1 = arith.constant 0 : i32
    return %c0_i32, %c0_i32_0 : i32, i32
  }
  func.func @transform_12(%arg0: i32) -> (i32, i32, i32) {
    %c0_i32 = arith.constant 0 : i32
    %c0_i32_0 = arith.constant 0 : i32
    %c0_i32_1 = arith.constant 0 : i32
    return %arg0, %c0_i32, %c0_i32_0 : i32, i32, i32
  }
}

</mosaic_0001>

<bundles_post_ra>
// kernel: tpu_custom_call.1
= control target key start
LH: loop header
LB: loop body
LE: loop exit
PB: predicated region body
PF: predicated region fallthrough
CT: control target
= control target key end

     0   :  { %s3533_s0 = inlined_call_operand.vmem [shape: f32[2,8,32], index: 0, kind: input, shape index: {}]   ;;  %s3534_s1 = inlined_call_operand.vmem [shape: f32[2,1,8], index: 1, kind: input, shape index: {}]   ;;  %s3535_s2 = inlined_call_operand.vmem [shape: f32[4,32,8], index: 2, kind: input, shape index: {}]   ;;  %s3536_s3 = inlined_call_operand.vmem [shape: f32[4,1,8], index: 3, kind: input, shape index: {}]   ;;  %s3537_s4 = inlined_call_operand.vmem [shape: f32[4,32,8], index: 4, kind: input, shape index: {}]   ;;  %s3538_s5 = inlined_call_operand.vmem [shape: f32[4,1,8], index: 5, kind: input, shape index: {}]   ;;  %s3539_s6 = inlined_call_operand.vmem [shape: f32[4,32,8], index: 6, kind: input, shape index: {}]   ;;  %s3540_s7 = inlined_call_operand.vmem [shape: f32[4,1,8], index: 7, kind: input, shape index: {}]   ;;  %s3541_s8 = inlined_call_operand.vmem [shape: f32[4,8,32], index: 8, kind: input, shape index: {}]   ;;  %s3542_s9 = inlined_call_operand.vmem [shape: f32[1,32], index: 9, kind: input, shape index: {}]   ;;  %s3543_s10 = inlined_call_operand.vmem [shape: f32[1,32], index: 10, kind: input, shape index: {}]   ;;  %s3544_s11 = inlined_call_operand.vmem [shape: f32[1,32], index: 11, kind: input, shape index: {}]   ;;  %s3545_s12 = inlined_call_operand.hbm [shape: f32[2,8,32], index: 12, kind: output, shape index: {}]  }
   0x1   :  { %3546 = sst [smem:[#allocation6_spill]] %s3533_s0 }
   0x2   :  { %3547 = sst [smem:[#allocation7_spill]] %s3534_s1 }
   0x3   :  { %3548 = sst [smem:[#allocation8_spill]] %s3535_s2 }
   0x4   :  { %17 = vsyncpa [#allocation3], 0 }
   0x5   :  { %19 = vsyncpa [#allocation3 + $0x1], 0  ;;  %s3064_s21 = smov 0   ;;  %s3066_s22 = smov 0  }
   0x6   :  { %s3068_s23 = smov 0   ;;  %s3070_s24 = smov 0  }
   0x7 LB: > { %s3085_s25 = sadd.s32 4294967295, %s2994_s24   ;;  %s2497_s26 = sadd.s32 4294967294, %s2994_s24   ;;  %s2994_s24 = sphi %s3070_s24, %s3559_s24   ;;  %s2990_s23 = sphi %s3068_s23, %s3558_s23   ;;  %s2986_s22 = sphi %s3066_s22, %s3557_s22   ;;  %s2982_s21 = sphi %s3064_s21, %s3556_s21  }
   0x8   : > { %s3089_s27 = sadd.s32 1, %s2994_s24   ;;  %s294_s28 = sadd.s32 1, %s2990_s23 }
   0x9   : > { %s291_s29 = ssub.s32 %s2994_s24, %s3089_s27  ;;  %p304_p0 = scmp.ne.s32.totalorder %s2990_s23, %s2986_s22 }
   0xa   : > { %p292_p1 = scmp.eq.s32.totalorder %s291_s29, 0  ;;  %p305_p2 = scmp.eq.s32.totalorder %s3085_s25, 1 }
   0xb   : > { %p310_p3 = scmp.ne.s32.totalorder %s2986_s22, %s2982_s21  ;;  %p311_p4 = scmp.eq.s32.totalorder %s2497_s26, 1 }
   0xc   : > { %s3100_s30 = scalar_select %p292_p1, %s2990_s23, %s294_s28  }
   0xd   : > { %p3102_p5 = por %p305_p2, %p304_p0  ;;  %p3106_p6 = por %p311_p4, %p310_p3 }
   0xe   : > { %3549 = sst [smem:[#allocation5_spill]] %s3100_s30  ;;  %p2500_p7 = scmp.ge.s32.totalorder %s2994_s24, 1 }
   0xf   : > { %p372_p8 = scmp.lt.s32.totalorder %s2994_s24, 3 }
  0x11   : > { %p373_p9 = pnand %p2500_p7, %p372_p8 }
  0x12   : > { %s3552_s2 = sld [smem:[#allocation8_spill]] (!%p373_p9)  ;;  %p416_p10 = scmp.lt.s32.totalorder (!%p373_p9), %s3085_s25, 1 }
  0x13   : > { %376 = sbr.rel (%p373_p9) target bundleno = 3982 (0xf8e), region = 68  ;;  %s3553_s0 = sld [smem:[#allocation6_spill]] (!%p373_p9) }
  0x14   : > { %s3554_s1 = sld [smem:[#allocation7_spill]] (!%p373_p9)  ;;  %s413_s16 = sand.u32 (!%p373_p9), 1, %s2986_s22  }
  0x15   : > { %s2501_s17 = sshll.u32 (!%p373_p9), %s413_s16, 3  ;;  %s2596_s26 = sshll.u32 (!%p373_p9), %s3085_s25, 7 }
  0x16   : > { %s2998_s18 = smov (!%p373_p9), [#allocation2]  }
  0x18   : > { %v513_v0 = vld [vmem:[%s3537_s4 + $0x18] sm:$0xff]  ;;  %v2996_v2 = vmov 0.0   ;;  %v512_v3 = vld [vmem:[%s3537_s4 + $0x10] sm:$0xff]  ;;  %s3128_s29 = scalar_select %p416_p10, %s3085_s25, 1  ;;  %v511_v5 = vld [vmem:[%s3537_s4 + $0x8] sm:$0xff]  ;;  %vm436_vm0 = vcmask 261120  }
  0x19   : > { %v428_v1 = vld [vmem:[%s3552_s2 + $0x18] sm:$0xff]  ;;  %2694 = vmatprep.subr.mxu1 %v2996_v2  ;;  %2683 = vmatprep.subr.mxu0 %v2996_v2  ;;  %v427_v4 = vld [vmem:[%s3552_s2 + $0x10] sm:$0xff]  ;;  %v426_v6 = vld [vmem:[%s3552_s2 + $0x8] sm:$0xff]  ;;  %vm2997_vm1 = vmmov 0   ;;  %vm672_vm2 = vcmask 64512  }
  0x1a   : > { %2695 = vmatpush3.msra.mxu1 %v513_v0  ;;  %2684 = vmatpush3.msra.mxu0 %v428_v1  ;;  %s2502_s19 = sshll.u32 %s3128_s29, 3  ;;  %v510_v7 = vld [vmem:[%s3537_s4] sm:$0xff]  ;;  %v594_v18 = vld [vmem:[%s3539_s6 + $0x18] sm:$0xff]  ;;  %v593_v19 = vld [vmem:[%s3539_s6 + $0x10] sm:$0xff]  ;;  %s422_s28 = scalar_lea.vmem %s3554_s1, %s3128_s29 }
  0x1b   : > { %2696 = vmatprep.subr.mxu1 %v2996_v2  ;;  %2685 = vmatprep.subr.mxu0 %v2996_v2  ;;  %s419_s15 = scalar_lea.vmem %s3553_s0, %s2502_s19  ;;  %v425_v8 = vld [vmem:[%s3552_s2] sm:$0xff]  ;;  %v592_v20 = vld [vmem:[%s3539_s6 + $0x8] sm:$0xff]  ;;  %v2516_v37 = vld [vmem:[%s3552_s2 + $0x38] sm:$0xff]  ;;  %s2427_s1 = scalar_lea.hbm %s3545_s12, %s2596_s26 }
  0x1c   : > { %2697 = vmatpush3.msra.mxu1 %v512_v3  ;;  %2686 = vmatpush3.msra.mxu0 %v427_v4  ;;  %v3152_v9 = vld [vmem:[%s419_s15] sm:$0xff]  ;;  %v2515_v38 = vld [vmem:[%s3552_s2 + $0x30] sm:$0xff]  ;;  %v2514_v39 = vld [vmem:[%s3552_s2 + $0x28] sm:$0xff]  ;;  %s2938_s19 = sshll.u32 %s2998_s18, 4  ;;  %s2939_s19 = int_to_ptr.vmem [resolvable:$false] %s2938_s19 }
  0x1d   : > { %2698 = vmatprep.subr.mxu1 %v2996_v2  ;;  %2687 = vmatprep.subr.mxu0 %v2996_v2  ;;  %v2505_v10 = vld [vmem:[%s3538_s5] ss:$0 sm:$0xff]  ;;  %v2523_v44 = vld [vmem:[%s3537_s4 + $0x38] sm:$0xff]  ;;  %v2522_v45 = vld [vmem:[%s3537_s4 + $0x30] sm:$0xff]  ;;  %s2940_s25 = scalar_lea.vmem %s2939_s19, 256 }
  0x1e   : > { %2699 = vmatpush3.msra.mxu1 %v511_v5  ;;  %2688 = vmatpush3.msra.mxu0 %v426_v6  ;;  %v2503_v11 = vld [vmem:[%s3536_s3] ss:$0 sm:$0xff]  ;;  %v2521_v46 = vld [vmem:[%s3537_s4 + $0x28] sm:$0xff]  ;;  %v2525_v52 = vld [vmem:[%s3538_s5 + $0x1] ss:$0 sm:$0xff] }
  0x1f   : > { %2700 = vmatprep.subr.mxu1 %v2996_v2  ;;  %2689 = vmatprep.subr.mxu0 %v2996_v2  ;;  %v591_v21 = vld [vmem:[%s3539_s6] sm:$0xff]  ;;  %v2530_v58 = vld [vmem:[%s3539_s6 + $0x38] sm:$0xff]  ;;  %v2529_v59 = vld [vmem:[%s3539_s6 + $0x30] sm:$0xff] }
  0x20   : > { %2701 = vmatpush3.msra.mxu1 %v510_v7  ;;  %2702 = vmatprep.mubr.msk.f32.mxu1 %vm2997_vm1, %v2996_v2  ;;  %v3203_v23 = vld [vmem:[%s422_s28] ss:$0 sm:$0xff]  ;;  %v2518_v53 = vld [vmem:[%s3536_s3 + $0x1] ss:$0 sm:$0xff]  ;;  %v2528_v60 = vld [vmem:[%s3539_s6 + $0x28] sm:$0xff]  ;;  %s415_s28 = scalar_lea.vmem [#allocation2], %s2501_s17 }
  0x21   : > { %2690 = vmatpush3.msra.mxu0 %v425_v8  ;;  %2691 = vmatprep.mubr.msk.f32.mxu0 %vm2997_vm1, %v2996_v2  ;;  %v2507_v33 = vld [vmem:[%s3540_s7] ss:$0 sm:$0xff]  ;;  %s2429_s15 = sshll.u32 %s415_s28, 4  ;;  %s2430_s15 = int_to_ptr.vmem [resolvable:$true] %s2429_s15 }
  0x22   : > { %2703 = vmatmul.mubr.msk.f32.vlgmr.msra.gmra.mxu1 %vm436_vm0, %v3152_v9  ;;  %2692 = vmatmul.mubr.msk.f32.vlgmr.msra.gmra.mxu0 %vm436_vm0, %v3152_v9  ;;  %v2513_v40 = vld [vmem:[%s3552_s2 + $0x20] sm:$0xff]  ;;  %s2934_s30 = scalar_lea.vmem %s2430_s15, 128  ;;  %p2941_p0 = scmp.lt.s32.totalorder %s2430_s15, %s2939_s19 }
  0x23   : > { %2716 = vmatprep.subr.mxu1 %v2996_v2  ;;  %2718 = vmatprep.mubr.msk.f32.mxu1 %vm2997_vm1, %v2996_v2  ;;  %v2520_v47 = vld [vmem:[%s3537_s4 + $0x20] sm:$0xff]  ;;  %p2935_p11 = scmp.ne.s32.totalorder %s2430_s15, %s2934_s30  ;;  %p2942_p1 = scmp.lt.s32.totalorder %s2940_s25, %s2934_s30 }
  0x24   : > { %2705 = vmatprep.subr.mxu0 %v2996_v2  ;;  %2713 = vmatprep.mubr.msk.f32.mxu0 %vm2997_vm1, %v2996_v2  ;;  %v2527_v61 = vld [vmem:[%s3539_s6 + $0x20] sm:$0xff] }
  0x25   : > { %2706 = vmatpush3.msra.mxu0 %v594_v18  ;;  %v841_v18 = vld [vmem:[%s3541_s8] sm:$0xff]  ;;  %p2936_p12 = pnand %p2935_p11, %p3102_p5  ;;  %p2943_p2 = por %p2942_p1, %p2941_p0 }
  0x26   : > { %2707 = vmatprep.subr.mxu0 %v2996_v2 }
  0x27   : > { %2708 = vmatpush3.msra.mxu0 %v593_v19  ;;  %v2550_v19 = vld [vmem:[%s3537_s4 + $0x58] sm:$0xff]  ;;  %p2937_p13 = pneg %p2936_p12 }
  0x28   : > { %2709 = vmatprep.subr.mxu0 %v2996_v2 }
  0x29   : > { %2710 = vmatpush3.msra.mxu0 %v592_v20  ;;  %v2549_v20 = vld [vmem:[%s3537_s4 + $0x50] sm:$0xff]  ;;  %p2944_p3 = pnand %p2943_p2, %p2937_p13 }
  0x2a   : > { %2711 = vmatprep.subr.mxu0 %v2996_v2 }
  0x2b   : > { %2712 = vmatpush3.msra.mxu0 %v591_v21  ;;  %v2548_v21 = vld [vmem:[%s3537_s4 + $0x48] sm:$0xff] }
  0x2c   : > { %2714 = vmatmul.mubr.msk.f32.vlgmr.msra.gmra.mxu0 %vm436_vm0, %v3152_v9  ;;  %2726 = vmatprep.subr.mxu0 %v2996_v2 }
  0x2d   : > { %2734 = vmatprep.mubr.msk.f32.mxu0 %vm2997_vm1, %v2996_v2  ;;  %2727 = vmatpush3.msra.mxu0 %v2516_v37 }
  0x2e   : > { %2728 = vmatprep.subr.mxu0 %v2996_v2 }
  0x2f   : > { %2729 = vmatpush3.msra.mxu0 %v2515_v38  ;;  %v2545_v38 = vld [vmem:[%s3536_s3 + $0x2] ss:$0 sm:$0xff] }
  0x30   : > { %2730 = vmatprep.subr.mxu0 %v2996_v2 }
  0x31   : > { %2731 = vmatpush3.msra.mxu0 %v2514_v39 }
  0x32   : > { %2732 = vmatprep.subr.mxu0 %v2996_v2 }
  0x33   : > { %2733 = vmatpush3.msra.mxu0 %v2513_v40 }
  0x34   : > { %2735 = vmatmul.mubr.msk.f32.vlgmr.msra.gmra.mxu0 %vm436_vm0, %v3152_v9  ;;  %2748 = vmatprep.subr.mxu0 %v2996_v2 }
  0x35   : > { %2756 = vmatprep.mubr.msk.f32.mxu0 %vm2997_vm1, %v2996_v2  ;;  %2749 = vmatpush3.msra.mxu0 %v2530_v58 }
  0x36   : > { %2750 = vmatprep.subr.mxu0 %v2996_v2 }
  0x37   : > { %2751 = vmatpush3.msra.mxu0 %v2529_v59 }
  0x38   : > { %2752 = vmatprep.subr.mxu0 %v2996_v2 }
  0x39   : > { %2753 = vmatpush3.msra.mxu0 %v2528_v60  ;;  %v2564_v60 = vld [vmem:[%s3541_s8 + $0x10] sm:$0xff] }
  0x3a   : > { %2754 = vmatprep.subr.mxu0 %v2996_v2 }
  0x3b   : > { %2755 = vmatpush3.msra.mxu0 %v2527_v61 }
  0x3c   : > { %2757 = vmatmul.mubr.msk.f32.vlgmr.msra.gmra.mxu0 %vm436_vm0, %v3152_v9  ;;  %2769 = vmatprep.subr.mxu0 %v2996_v2 }
  0x3d   : > { %2771 = vmatprep.mubr.msk.f32.mxu0 %vm2997_vm1, %v2996_v2 }
  0xe2   : > { %v587_v12 = vpop.f32.mrf.mxu1  ;;  %v506_v13 = vpop.f32.mrf.mxu0 }
  0xe3   : > { %v588_v14 = vadd.f32 %v2505_v10, %v587_v12  ;;  %v507_v15 = vadd.f32 %v2503_v11, %v506_v13  ;;  %v2532_v10 = vld [vmem:[%s3540_s7 + $0x1] ss:$0 sm:$0xff] }
  0xe4   : > { %v2704_v16 = vpop.f32.mrf.mxu1  ;;  %v2693_v17 = vpop.f32.mrf.mxu0 }
  0xe5   : > { %2717 = vmatpush3.xpose.msk.msra.mxu1 %vm672_vm2, %v588_v14  ;;  %v2537_v14 = vld [vmem:[%s3541_s8 + $0x8] sm:$0xff] }
  0xe6   : > { %2721 = vmatprep.subr.mxu1 %v2996_v2  ;;  %2770 = vmatpush3.msra.mxu0 %v2537_v14 }
  0xe7   : > { %2779 = vmatprep.subr.mxu0 %v2996_v2 }
  0xe8   : > { %2719 = vmatmul.mubr.msk.f32.vlgmr.msra.gmra.mxu1 %vm672_vm2, %v507_v15 }
  0xe9   : > { %2723 = vmatprep.mubr.msk.f32.mxu1 %vm2997_vm1, %v2996_v2 }
  0xec   : > { %v668_v34 = vpop.f32.mrf.mxu0 }
  0xed   : > { %v669_v35 = vadd.f32 %v2507_v33, %v668_v34 }
  0xee   : > { %v2715_v36 = vpop.f32.mrf.mxu0 }
  0xef   : > { %2722 = vmatpush3.msra.mxu1 %v669_v35 }
  0xf0   : > { %2737 = vmatprep.subr.mxu1 %v2996_v2 }
  0xf4   : > { %v921_v48 = vpop.f32.mrf.mxu0 }
  0xf5   : > { %v922_v56 = vadd.f32 %v2518_v53, %v921_v48 }
  0xf6   : > { %v2736_v49 = vpop.f32.mrf.mxu0 }
  0xfc   : > { %v1087_v11 = vpop.f32.mrf.mxu0 }
  0xfd   : > { %v1088_v12 = vadd.f32 %v2532_v10, %v1087_v11  ;;  %v2574_v10 = vld [vmem:[%s3537_s4 + $0x68] sm:$0xff]  ;;  %v2573_v11 = vld [vmem:[%s3537_s4 + $0x60] sm:$0xff] }
  0xfe   : > { %v2758_v13 = vpop.f32.mrf.mxu0 }
 0x1a8   : > { %v745_v22 = vpop.f32.mrf.mxu1 }
 0x1a9   : > { %v749_v24 = vmul.f32 0.35355338, %v745_v22  ;;  %v2547_v22 = vld [vmem:[%s3537_s4 + $0x40] sm:$0xff] }
 0x1aa   : > { %v2720_v25 = vpop.f32.mrf.mxu1 }
 0x1ab   : > { %v756_v26 = vadd.f32 %v3203_v23, %v749_v24  ;;  %v2543_v24 = vld [vmem:[%s3552_s2 + $0x58] sm:$0xff] }
 0x1ad   : > { %v757_v27 = vsel %vm672_vm2, %v756_v26, -inf }
 0x1ae   : > { %758 = vmax.xlane.f32.xlu0 %v757_v27 }
 0x237   : > { %v759_v28 = vpop.xlane.xlu0 %758 }
 0x238   : > { %v760_v29 = vsub.f32 %v756_v26, %v759_v28  ;;  %v2542_v26 = vld [vmem:[%s3552_s2 + $0x50] sm:$0xff]  ;;  %v2541_v28 = vld [vmem:[%s3552_s2 + $0x48] sm:$0xff] }
 0x23a   : > { %v761_v30 = vmul.f32 1.442695, %v760_v29 }
 0x23c   : > { %2916 = vpow2.f32 %v761_v30  ;;  %v2540_v30 = vld [vmem:[%s3552_s2 + $0x40] sm:$0xff] }
 0x249   : > { %v2917_v31 = vpop.eup %2916 }
 0x24a   : > { %v763_v32 = vsel %vm672_vm2, %v2917_v31, 0.0 }
 0x24b   : > { %764 = vadd.xlane.f32.xlu0 %v763_v32  ;;  %v2552_v32 = vld [vmem:[%s3538_s5 + $0x2] ss:$0 sm:$0xff] }
 0x2d4   : > { %v765_v41 = vpop.xlane.xlu0 %764 }
 0x2d5   : > { %2918 = vrcp.f32 %v765_v41 }
 0x2e2   : > { %v2919_v42 = vpop.eup %2918 }
 0x2e3   : > { %v767_v43 = vmul.f32 %v2919_v42, %v2917_v31  ;;  %v2557_v42 = vld [vmem:[%s3539_s6 + $0x58] sm:$0xff] }
 0x2e5   : > { %2724 = vmatmul.mubr.msk.f32.vlgmr.msra.gmra.mxu1 %vm672_vm2, %v767_v43  ;;  %v2556_v43 = vld [vmem:[%s3539_s6 + $0x50] sm:$0xff] }
 0x2e6   : > { %2738 = vmatpush3.msra.mxu1 %v2523_v44  ;;  %2745 = vmatprep.mubr.msk.f32.mxu1 %vm2997_vm1, %v2996_v2  ;;  %v2555_v44 = vld [vmem:[%s3539_s6 + $0x48] sm:$0xff] }
 0x2e7   : > { %2739 = vmatprep.subr.mxu1 %v2996_v2 }
 0x2e8   : > { %2740 = vmatpush3.msra.mxu1 %v2522_v45  ;;  %v2554_v45 = vld [vmem:[%s3539_s6 + $0x40] sm:$0xff] }
 0x2e9   : > { %2741 = vmatprep.subr.mxu1 %v2996_v2 }
 0x2ea   : > { %2742 = vmatpush3.msra.mxu1 %v2521_v46 }
 0x2eb   : > { %2743 = vmatprep.subr.mxu1 %v2996_v2 }
 0x2ec   : > { %2744 = vmatpush3.msra.mxu1 %v2520_v47 }
 0x2ed   : > { %2746 = vmatmul.mubr.msk.f32.vlgmr.msra.gmra.mxu1 %vm436_vm0, %v3152_v9  ;;  %2759 = vmatprep.subr.mxu1 %v2996_v2 }
 0x2ee   : > { %2761 = vmatprep.mubr.msk.f32.mxu1 %vm2997_vm1, %v2996_v2 }
 0x3a5   : > { %v837_v50 = vpop.f32.mrf.mxu1 }
 0x3a7   : > { %v2725_v51 = vpop.f32.mrf.mxu1 }
 0x3ad   : > { %v1004_v54 = vpop.f32.mrf.mxu1 }
 0x3ae   : > { %v1005_v55 = vadd.f32 %v2525_v52, %v1004_v54 }
 0x3af   : > { %v2747_v57 = vpop.f32.mrf.mxu1 }
 0x3b0   : > { %2760 = vmatpush3.xpose.msk.msra.mxu1 %vm672_vm2, %v1005_v55 }
 0x3b1   : > { %2764 = vmatprep.subr.mxu1 %v2996_v2 }
 0x3b3   : > { %2762 = vmatmul.mubr.msk.f32.vlgmr.msra.gmra.mxu1 %vm672_vm2, %v922_v56  ;;  %v2559_v56 = vld [vmem:[%s3540_s7 + $0x2] ss:$0 sm:$0xff] }
 0x3b4   : > { %2766 = vmatprep.mubr.msk.f32.mxu1 %vm2997_vm1, %v2996_v2  ;;  %2765 = vmatpush3.msra.mxu1 %v1088_v12 }
 0x3b5   : > { %2774 = vmatprep.subr.mxu1 %v2996_v2 }
 0x473   : > { %v1163_v62 = vpop.f32.mrf.mxu1 }
 0x474   : > { %v1167_v63 = vmul.f32 0.35355338, %v1163_v62 }
 0x475   : > { %v2763_v0 = vpop.f32.mrf.mxu1 }
 0x476   : > { %v1168_v1 = vadd.f32 %v3203_v23, %v1167_v63  ;;  %v2569_v0 = vld [vmem:[%s3552_s2 + $0x78] sm:$0xff] }
 0x478   : > { %v1169_v3 = vsel %vm672_vm2, %v1168_v1, -inf }
 0x479   : > { %1170 = vmax.xlane.f32.xlu1 %v1169_v3  ;;  %v2567_v3 = vld [vmem:[%s3552_s2 + $0x68] sm:$0xff] }
 0x502   : > { %v1171_v4 = vpop.xlane.xlu1 %1170 }
 0x503   : > { %v1172_v5 = vsub.f32 %v1168_v1, %v1171_v4  ;;  %v2568_v1 = vld [vmem:[%s3552_s2 + $0x70] sm:$0xff]  ;;  %v2566_v4 = vld [vmem:[%s3552_s2 + $0x60] sm:$0xff]  ;;  %s2416_s2 = scalar_lea.sflag [#allocation3], %s413_s16 }
 0x505   : > { %v1173_v6 = vmul.f32 1.442695, %v1172_v5  ;;  %v2576_v5 = vld [vmem:[%s3537_s4 + $0x78] sm:$0xff] }
 0x507   : > { %2920 = vpow2.f32 %v1173_v6 }
 0x514   : > { %v2921_v7 = vpop.eup %2920 }
 0x515   : > { %v1175_v8 = vsel %vm672_vm2, %v2921_v7, 0.0 }
 0x516   : > { %1176 = vadd.xlane.f32.xlu1 %v1175_v8 }
 0x59f   : > { %v1177_v15 = vpop.xlane.xlu1 %1176 }
 0x5a0   : > { %2922 = vrcp.f32 %v1177_v15 }
 0x5ad   : > { %v2923_v16 = vpop.eup %2922 }
 0x5ae   : > { %v1179_v17 = vmul.f32 %v2923_v16, %v2921_v7  ;;  %v2575_v7 = vld [vmem:[%s3537_s4 + $0x70] sm:$0xff] }
 0x5b0   : > { %2767 = vmatmul.mubr.msk.f32.vlgmr.msra.gmra.mxu1 %vm672_vm2, %v1179_v17 }
 0x5b1   : > { %2775 = vmatpush3.msra.mxu1 %v841_v18  ;;  %2776 = vmatprep.mubr.msk.f32.mxu1 %vm2997_vm1, %v2996_v2  ;;  %v2578_v18 = vld [vmem:[%s3538_s5 + $0x3] ss:$0 sm:$0xff] }
 0x5b2   : > { %2790 = vmatprep.subr.mxu1 %v2996_v2 }
 0x5b4   : > { %2777 = vmatmul.mubr.msk.f32.vlgmr.msra.gmra.mxu1 %vm672_vm2, %v837_v50 }
 0x5b5   : > { %2791 = vmatpush3.msra.mxu1 %v2550_v19  ;;  %2798 = vmatprep.mubr.msk.f32.mxu1 %vm2997_vm1, %v2996_v2  ;;  %v2571_v19 = vld [vmem:[%s3536_s3 + $0x3] ss:$0 sm:$0xff] }
 0x5b6   : > { %2792 = vmatprep.subr.mxu1 %v2996_v2 }
 0x5b7   : > { %2793 = vmatpush3.msra.mxu1 %v2549_v20 }
 0x5b8   : > { %2794 = vmatprep.subr.mxu1 %v2996_v2 }
 0x5b9   : > { %2795 = vmatpush3.msra.mxu1 %v2548_v21 }
 0x5ba   : > { %2796 = vmatprep.subr.mxu1 %v2996_v2 }
 0x5bb   : > { %2797 = vmatpush3.msra.mxu1 %v2547_v22 }
 0x5bc   : > { %2799 = vmatmul.mubr.msk.f32.vlgmr.msra.gmra.mxu1 %vm436_vm0, %v3152_v9  ;;  %2812 = vmatprep.subr.mxu1 %v2996_v2 }
 0x5bd   : > { %2814 = vmatprep.mubr.msk.f32.mxu1 %vm2997_vm1, %v2996_v2 }
 0x670   : > { %v1249_v25 = vpop.f32.mrf.mxu1 }
 0x671   : > { %2772 = vmatmul.mubr.msk.f32.vlgmr.msra.gmra.mxu0 %vm672_vm2, %v1249_v25  ;;  %v2583_v25 = vld [vmem:[%s3539_s6 + $0x78] sm:$0xff] }
 0x672   : > { %2780 = vmatpush3.msra.mxu0 %v2543_v24  ;;  %v2768_v27 = vpop.f32.mrf.mxu1  ;;  %2787 = vmatprep.mubr.msk.f32.mxu0 %vm2997_vm1, %v2996_v2 }
 0x673   : > { %2781 = vmatprep.subr.mxu0 %v2996_v2  ;;  %v2581_v27 = vld [vmem:[%s3539_s6 + $0x68] sm:$0xff] }
 0x674   : > { %2782 = vmatpush3.msra.mxu0 %v2542_v26  ;;  %v3340_v29 = vpop.f32.mrf.mxu1  ;;  %v2582_v26 = vld [vmem:[%s3539_s6 + $0x70] sm:$0xff] }
 0x675   : > { %2783 = vmatprep.subr.mxu0 %v2996_v2 }
 0x676   : > { %2784 = vmatpush3.msra.mxu0 %v2541_v28  ;;  %v2778_v31 = vpop.f32.mrf.mxu1  ;;  %v2580_v28 = vld [vmem:[%s3539_s6 + $0x60] sm:$0xff] }
 0x677   : > { %2785 = vmatprep.subr.mxu0 %v2996_v2 }
 0x678   : > { %2786 = vmatpush3.msra.mxu0 %v2540_v30 }
 0x679   : > { %2788 = vmatmul.mubr.msk.f32.vlgmr.msra.gmra.mxu0 %vm436_vm0, %v3152_v9  ;;  %2801 = vmatprep.subr.mxu0 %v2996_v2 }
 0x67a   : > { %2809 = vmatprep.mubr.msk.f32.mxu0 %vm2997_vm1, %v2996_v2  ;;  %2802 = vmatpush3.msra.mxu0 %v2557_v42 }
 0x67b   : > { %2803 = vmatprep.subr.mxu0 %v2996_v2 }
 0x67c   : > { %v1563_v33 = vpop.f32.mrf.mxu1  ;;  %2804 = vmatpush3.msra.mxu0 %v2556_v43 }
 0x67d   : > { %v1564_v34 = vadd.f32 %v2552_v32, %v1563_v33  ;;  %2805 = vmatprep.subr.mxu0 %v2996_v2 }
 0x67e   : > { %v2800_v35 = vpop.f32.mrf.mxu1  ;;  %2806 = vmatpush3.msra.mxu0 %v2555_v44 }
 0x67f   : > { %2813 = vmatpush3.xpose.msk.msra.mxu1 %vm672_vm2, %v1564_v34  ;;  %2807 = vmatprep.subr.mxu0 %v2996_v2 }
 0x680   : > { %2817 = vmatprep.subr.mxu1 %v2996_v2  ;;  %2808 = vmatpush3.msra.mxu0 %v2554_v45 }
 0x681   : > { %2810 = vmatmul.mubr.msk.f32.vlgmr.msra.gmra.mxu0 %vm436_vm0, %v3152_v9  ;;  %2822 = vmatprep.subr.mxu0 %v2996_v2 }
 0x682   : > { %2824 = vmatprep.mubr.msk.f32.mxu0 %vm2997_vm1, %v2996_v2  ;;  %2823 = vmatpush3.msra.mxu0 %v2564_v60 }
 0x683   : > { %2838 = vmatprep.subr.mxu0 %v2996_v2 }
 0x731   : > { %v3357_v36 = vpop.f32.mrf.mxu0 }
 0x732   : > { %v1398_v14 = vadd.f32 %v3340_v29, %v3357_v36 }
 0x733   : > { %v2773_v37 = vpop.f32.mrf.mxu0 }
 0x739   : > { %v1480_v39 = vpop.f32.mrf.mxu0 }
 0x73a   : > { %v1481_v40 = vadd.f32 %v2545_v38, %v1480_v39 }
 0x73b   : > { %v2789_v41 = vpop.f32.mrf.mxu0 }
 0x73c   : > { %2815 = vmatmul.mubr.msk.f32.vlgmr.msra.gmra.mxu1 %vm672_vm2, %v1481_v40 }
 0x73d   : > { %2819 = vmatprep.mubr.msk.f32.mxu1 %vm2997_vm1, %v2996_v2 }
 0x741   : > { %v1646_v57 = vpop.f32.mrf.mxu0 }
 0x742   : > { %v1647_v58 = vadd.f32 %v2559_v56, %v1646_v57 }
 0x743   : > { %v2811_v59 = vpop.f32.mrf.mxu0 }
 0x744   : > { %2818 = vmatpush3.msra.mxu1 %v1647_v58 }
 0x745   : > { %2827 = vmatprep.subr.mxu1 %v2996_v2 }
 0x7fc   : > { %v1722_v46 = vpop.f32.mrf.mxu1 }
 0x7fd   : > { %v1726_v47 = vmul.f32 0.35355338, %v1722_v46 }
 0x7fe   : > { %v2816_v48 = vpop.f32.mrf.mxu1 }
 0x7ff   : > { %v1727_v49 = vadd.f32 %v3203_v23, %v1726_v47  ;;  %v2592_v48 = vld [vmem:[%s3542_s9] ss:$0 sm:$0xff] }
 0x801   : > { %v1728_v50 = vsel %vm672_vm2, %v1727_v49, -inf }
 0x802   : > { %1729 = vmax.xlane.f32.xlu0 %v1728_v50 }
 0x88b   : > { %v1730_v51 = vpop.xlane.xlu0 %1729 }
 0x88c   : > { %v1731_v52 = vsub.f32 %v1727_v49, %v1730_v51 }
 0x88e   : > { %v1732_v53 = vmul.f32 1.442695, %v1731_v52 }
 0x890   : > { %2924 = vpow2.f32 %v1732_v53 }
 0x89d   : > { %v2925_v54 = vpop.eup %2924 }
 0x89e   : > { %v1734_v55 = vsel %vm672_vm2, %v2925_v54, 0.0 }
 0x89f   : > { %1735 = vadd.xlane.f32.xlu1 %v1734_v55 }
 0x928   : > { %v1736_v61 = vpop.xlane.xlu1 %1735 }
 0x929   : > { %2926 = vrcp.f32 %v1736_v61 }
 0x936   : > { %v2927_v62 = vpop.eup %2926 }
 0x937   : > { %v1738_v63 = vmul.f32 %v2927_v62, %v2925_v54 }
 0x939   : > { %2820 = vmatmul.mubr.msk.f32.vlgmr.msra.gmra.mxu1 %vm672_vm2, %v1738_v63 }
 0x93a   : > { %2835 = vmatprep.mubr.msk.f32.mxu1 %vm2997_vm1, %v2996_v2  ;;  %2828 = vmatpush3.msra.mxu1 %v2569_v0  ;;  %v2594_v0 = vld [vmem:[%s3544_s11] ss:$0 sm:$0xff] }
 0x93b   : > { %2829 = vmatprep.subr.mxu1 %v2996_v2 }
 0x93c   : > { %2830 = vmatpush3.msra.mxu1 %v2568_v1 }
 0x93d   : > { %2831 = vmatprep.subr.mxu1 %v2996_v2 }
 0x93e   : > { %2832 = vmatpush3.msra.mxu1 %v2567_v3 }
 0x93f   : > { %2833 = vmatprep.subr.mxu1 %v2996_v2 }
 0x940   : > { %2834 = vmatpush3.msra.mxu1 %v2566_v4 }
 0x941   : > { %2836 = vmatmul.mubr.msk.f32.vlgmr.msra.gmra.mxu1 %vm436_vm0, %v3152_v9  ;;  %2849 = vmatprep.subr.mxu1 %v2996_v2 }
 0x942   : > { %2857 = vmatprep.mubr.msk.f32.mxu1 %vm2997_vm1, %v2996_v2  ;;  %2850 = vmatpush3.msra.mxu1 %v2583_v25 }
 0x943   : > { %2851 = vmatprep.subr.mxu1 %v2996_v2 }
 0x944   : > { %2852 = vmatpush3.msra.mxu1 %v2582_v26 }
 0x945   : > { %2853 = vmatprep.subr.mxu1 %v2996_v2 }
 0x946   : > { %2854 = vmatpush3.msra.mxu1 %v2581_v27 }
 0x947   : > { %2855 = vmatprep.subr.mxu1 %v2996_v2 }
 0x948   : > { %2856 = vmatpush3.msra.mxu1 %v2580_v28 }
 0x949   : > { %2858 = vmatmul.mubr.msk.f32.vlgmr.msra.gmra.mxu1 %vm436_vm0, %v3152_v9  ;;  %2870 = vmatprep.subr.mxu1 %v2996_v2 }
 0x94a   : > { %2872 = vmatprep.mubr.msk.f32.mxu1 %vm2997_vm1, %v2996_v2 }
 0x9f9   : > { %v1808_v6 = vpop.f32.mrf.mxu1 }
 0x9fa   : > { %2825 = vmatmul.mubr.msk.f32.vlgmr.msra.gmra.mxu0 %vm672_vm2, %v1808_v6 }
 0x9fb   : > { %2839 = vmatpush3.msra.mxu0 %v2576_v5  ;;  %v2821_v8 = vpop.f32.mrf.mxu1  ;;  %2846 = vmatprep.mubr.msk.f32.mxu0 %vm2997_vm1, %v2996_v2 }
 0x9fc   : > { %2840 = vmatprep.subr.mxu0 %v2996_v2 }
 0x9fd   : > { %2841 = vmatpush3.msra.mxu0 %v2575_v7 }
 0x9fe   : > { %2842 = vmatprep.subr.mxu0 %v2996_v2 }
 0x9ff   : > { %2843 = vmatpush3.msra.mxu0 %v2574_v10 }
 0xa00   : > { %2844 = vmatprep.subr.mxu0 %v2996_v2 }
 0xa01   : > { %2845 = vmatpush3.msra.mxu0 %v2573_v11  ;;  %v1967_v12 = vpop.f32.mrf.mxu1 }
 0xa02   : > { %2847 = vmatmul.mubr.msk.f32.vlgmr.msra.gmra.mxu0 %vm436_vm0, %v3152_v9  ;;  %2860 = vmatprep.subr.mxu0 %v2996_v2  ;;  %v1968_v22 = vadd.f32 %v2571_v19, %v1967_v12 }
 0xa03   : > { %2862 = vmatprep.mubr.msk.f32.mxu0 %vm2997_vm1, %v2996_v2  ;;  %v2837_v13 = vpop.f32.mrf.mxu1 }
 0xa09   : > { %v2133_v39 = vpop.f32.mrf.mxu1 }
 0xa0b   : > { %v2859_v41 = vpop.f32.mrf.mxu1 }
 0xaba   : > { %v1883_v15 = vpop.f32.mrf.mxu0 }
 0xabb   : > { %v1887_v16 = vadd.f32 %v1883_v15, %v1398_v14 }
 0xabc   : > { %v2826_v17 = vpop.f32.mrf.mxu0 }
 0xac2   : > { %v2050_v20 = vpop.f32.mrf.mxu0 }
 0xac3   : > { %v2051_v21 = vadd.f32 %v2578_v18, %v2050_v20 }
 0xac4   : > { %v2848_v24 = vpop.f32.mrf.mxu0 }
 0xac5   : > { %2861 = vmatpush3.xpose.msk.msra.mxu0 %vm672_vm2, %v2051_v21 }
 0xac6   : > { %2865 = vmatprep.subr.mxu0 %v2996_v2 }
 0xac8   : > { %2863 = vmatmul.mubr.msk.f32.vlgmr.msra.gmra.mxu0 %vm672_vm2, %v1968_v22 }
 0xac9   : > { %2867 = vmatprep.mubr.msk.f32.mxu0 %vm2997_vm1, %v2996_v2  ;;  %v2585_v2 = vld [vmem:[%s3540_s7 + $0x3] ss:$0 sm:$0xff] }
 0xaca   : > { %v2134_v40 = vadd.f32 %v2585_v2, %v2133_v39 }
 0xacc   : > { %2866 = vmatpush3.msra.mxu0 %v2134_v40 }
 0xb88   : > { %v2209_v29 = vpop.f32.mrf.mxu0 }
 0xb89   : > { %v2213_v30 = vmul.f32 0.35355338, %v2209_v29 }
 0xb8a   : > { %v2864_v31 = vpop.f32.mrf.mxu0 }
 0xb8b   : > { %v2214_v32 = vadd.f32 %v3203_v23, %v2213_v30  ;;  %v2590_v23 = vld [vmem:[%s3541_s8 + $0x18] sm:$0xff] }
 0xb8c   : > { %2871 = vmatpush3.msra.mxu1 %v2590_v23 }
 0xb8d   : > { %v2215_v33 = vsel %vm672_vm2, %v2214_v32, -inf }
 0xb8e   : > { %2216 = vmax.xlane.f32.xlu0 %v2215_v33 }
 0xc17   : > { %v2217_v34 = vpop.xlane.xlu0 %2216 }
 0xc18   : > { %v2218_v35 = vsub.f32 %v2214_v32, %v2217_v34 }
 0xc1a   : > { %v2219_v36 = vmul.f32 1.442695, %v2218_v35 }
 0xc1c   : > { %2928 = vpow2.f32 %v2219_v36 }
 0xc29   : > { %v2929_v37 = vpop.eup %2928 }
 0xc2a   : > { %v2221_v38 = vsel %vm672_vm2, %v2929_v37, 0.0 }
 0xc2b   : > { %2222 = vadd.xlane.f32.xlu1 %v2221_v38 }
 0xcb4   : > { %v2223_v42 = vpop.xlane.xlu1 %2222 }
 0xcb5   : > { %2930 = vrcp.f32 %v2223_v42 }
 0xcc2   : > { %v2931_v43 = vpop.eup %2930 }
 0xcc3   : > { %v2225_v44 = vmul.f32 %v2931_v43, %v2929_v37 }
 0xcc5   : > { %2868 = vmatmul.mubr.msk.f32.vlgmr.msra.gmra.mxu0 %vm672_vm2, %v2225_v44 }
 0xd85   : > { %v2295_v45 = vpop.f32.mrf.mxu0 }
 0xd86   : > { %2873 = vmatmul.mubr.msk.f32.vlgmr.msra.gmra.mxu1 %vm672_vm2, %v2295_v45 }
 0xd87   : > { %v2869_v46 = vpop.f32.mrf.mxu0 }
 0xe46   : > { %v2370_v47 = vpop.f32.mrf.mxu1 }
 0xe47   : > { %v2374_v49 = vadd.f32 %v2370_v47, %v1887_v16 }
 0xe48   : > { %v2874_v50 = vpop.f32.mrf.mxu1 }
 0xe49   : > { %v2382_v51 = vadd.f32 %v2592_v48, %v2374_v49 }
 0xe4b   : > { %v2383_v52 = vadd.f32 %v2382_v51, %v3152_v9  ;;  %v2593_v9 = vld [vmem:[%s3543_s10] ss:$0 sm:$0xff] }
 0xe4d   : > { %v2384_v53 = vsel %vm436_vm0, %v2383_v52, 0.0 }
 0xe4e   : > { %2385 = vadd.xlane.f32.xlu0 %v2384_v53 }
 0xed7   : > { %v2386_v54 = vpop.xlane.xlu0 %2385 }
 0xed8   : > { %v2388_v55 = vmul.f32 0.03125, %v2386_v54 }
 0xeda   : > { %v2389_v56 = vsub.f32 %v2383_v52, %v2388_v55 }
 0xedc   : > { %v2390_v57 = vmul.f32 %v2389_v56, %v2389_v56 }
 0xede   : > { %v2391_v58 = vsel %vm436_vm0, %v2390_v57, 0.0 }
 0xedf   : > { %2392 = vadd.xlane.f32.xlu1 %v2391_v58 }
 0xf68   : > { %v2393_v59 = vpop.xlane.xlu1 %2392 }
 0xf69   : > { %v2394_v60 = vmul.f32 0.03125, %v2393_v59 }
 0xf6b   : > { %v2395_v61 = vadd.f32 1e-12, %v2394_v60 }
 0xf6d   : > { %2932 = vrsqrt.f32 %v2395_v61 }
 0xf7a   : > { %v2933_v62 = vpop.eup %2932 }
 0xf7b   : > { %v2397_v63 = vmul.f32 %v2933_v62, %v2389_v56 }
 0xf7d   : > { %v2405_v1 = vmul.f32 %v2593_v9, %v2397_v63 }
 0xf7f   : > { %v2413_v3 = vadd.f32 %v2594_v0, %v2405_v1 }
 0xf81   : > { %2414 = vst.msk [vmem:[%s415_s28] sm:$0xff] %vm436_vm0, %v2413_v3 }
 0xf82   : > { %2947 = shalt.err (!%p2944_p3)
}
 0xf83   : > { %s2948_s0 = scalar_lea.hbm %s2427_s1, 128  ;;  %s2952_s20 = scalar_lea.hbm %s3545_s12, 256 }
 0xf84   : > { %p2949_p4 = scmp.ne.s32.totalorder %s2427_s1, %s2948_s0  ;;  %p2953_p9 = scmp.lt.s32.totalorder %s2427_s1, %s3545_s12 }
 0xf85   : > { %p2954_p10 = scmp.lt.s32.totalorder %s2952_s20, %s2948_s0 }
 0xf86   : > { %p2950_p7 = pnand %p2949_p4, %p3102_p5 }
 0xf87   : > { %p2955_p11 = por %p2954_p10, %p2953_p9 }
 0xf88   : > { %p2951_p8 = pneg %p2950_p7 }
 0xf8a   : > { %p2956_p12 = pnand %p2955_p11, %p2951_p8 }
 0xf8c   : > { %2959 = shalt.err (!%p2956_p12)
}
 0xf8d   : > { %2875 = dma.vmem_to_hbm [thread:$0]  (%p3102_p5), %s2430_s15, 128, %s2427_s1, %s2416_s2  }
 0xf8e PF: > { %p2881_p13 = scmp.ge.s32.totalorder %s2994_s24, 2  ;;  %s2441_s29 = sand.u32 1, %s2982_s21  }
 0xf8f   : > { %s2442_s30 = scalar_lea.sflag [#allocation3], %s2441_s29 }
 0xf90   : > { %p2878_p0 = pnand %p2881_p13, %p3106_p6 }
 0xf92   : > { %p2879_p1 = pneg %p2878_p0 }
 0xf94   : > { %2977 = dma.done.wait (%p2879_p1), %s2442_s30, 128  }
 0xf95   : > { %2979 = vsyncadd (%p2879_p1), %s2442_s30, 4294967168  ;;  %s3555_s18 = sld [smem:[#allocation5_spill]]  ;;  %p22_p2 = scmp.ge.s32.totalorder %s3089_s27, 4  }
 0xf96   : > { %s3556_s21 = smov %s2986_s22  ;;  %s3557_s22 = smov %s2990_s23 }
 0xf97   : > { %s3559_s24 = smov %s3089_s27  ;;  %24 = sbr.rel (!%p22_p2) target bundleno = 7 (0x7), region = 127 }
 0xf9b   : > { %s3558_s23 = smov %s3555_s18 }
 0xf9c   :  { %2447 = vsyncpa [#allocation3], 1 }
 0xf9d   :  { %2449 = vsyncpa [#allocation3 + $0x1], 1 }

</bundles_post_ra>
